<compile_context>
chip_gen: v7x
topology: tpu7x:2x2x1
jax: 0.10.0
libtpu: 0.0.40
codegen_flags: <defaults>
</compile_context>

<pallas_src>
import functools

import jax
import jax.numpy as jnp
import numpy as np
from jax import lax
from jax.experimental import pallas as pl
from jax.experimental.pallas import tpu as pltpu


def _round_up(x, m):
    return (x + m - 1) // m * m


# ----------------------------- Pallas kernel -------------------------------

def _convnet_kernel(*refs):
    """Fully fused ConvNet forward for ONE image (grid iterates over batch).

    refs = [m0,  (wc_cat, ps_big, b2d) * L,  wfc_emb, bfc,  out]
      m0      : (Rp0, Kp0)            padded per-image activation (bf16)
      wc_cat  : (Kp_in, 6*Kp_out)     six column/col-pool operators, lane-concat (bf16)
      ps_big  : (2*Rp_out, 3*Rp_in)   row-tap + row-pool 0/1 operator, both b's (f32)
      b2d     : (Rp_out, Kp_out)      bias embedded in padded layout, 0 on pads (f32)
      wfc_emb : (Kp_last, 128)        fc weight at the real feature lanes (bf16)
      bfc     : (1, 128)              fc bias, first num_classes lanes (f32)
      out     : (Rp_last, 128)        logits live in row 1, lanes [0, num_classes)
    """
    m_ref = refs[0]
    o_ref = refs[-1]
    wfc_ref, bfc_ref = refs[-3], refs[-2]
    layer_refs = refs[1:-3]
    n_layers = len(layer_refs) // 3

    m = m_ref[...]                                    # (Rp_in, Kp_in) bf16
    for l in range(n_layers):
        wc_ref, ps_ref, b_ref = layer_refs[3 * l:3 * l + 3]
        kp_out = wc_ref.shape[1] // 6
        rp_out = ps_ref.shape[0] // 2

        # Conv along W + column pool/re-pad: all six (dh, a) operators fused into
        # ONE lane-dense MXU dot (bf16 operands, f32 accumulation).
        t_all = jnp.dot(m, wc_ref[...], preferred_element_type=jnp.float32)

        # Stack the three dh slices along rows -> (3*Rp_in, 2*Kp_out).
        # Slices are 256-lane aligned; row counts are multiples of 8.
        t_stack = jnp.concatenate(
            [t_all[:, (2 * dh) * kp_out:(2 * dh + 2) * kp_out] for dh in range(3)],
            axis=0)

        # Row taps + row pool/re-pad for BOTH pooling row-offsets b in one dot.
        # 0/1 selection matrix kept in f32 so the dh-sum is exact.
        y_big = jnp.dot(ps_ref[...], t_stack, preferred_element_type=jnp.float32)

        # 2x2 max-pool = elementwise max over the four (b, a) quadrants.
        pooled = jnp.maximum(
            jnp.maximum(y_big[:rp_out, :kp_out], y_big[:rp_out, kp_out:]),
            jnp.maximum(y_big[rp_out:, :kp_out], y_big[rp_out:, kp_out:]))

        # conv -> maxpool -> ReLU (bias added once after the pooled max; the masked
        # bias keeps pad rows/lanes exactly zero).  bf16 for the next MXU dot.
        m = jnp.maximum(pooled + b_ref[...], 0.0).astype(jnp.bfloat16)
        # TODO(synk): nn.Dropout(0.3) is identity in eval mode; training-mode
        # masking (pltpu.prng_seed / prng_random_bits) is not implemented.

    # Fused final Linear: one lane-dense dot; the real image row is row 1.
    logits = jnp.dot(m, wfc_ref[...], preferred_element_type=jnp.float32)
    o_ref[...] = (logits + bfc_ref[...]).astype(o_ref.dtype)


# ------------------- one-time wrapper-side operator folding -----------------

def fold_convnet_params(params, H, W, num_classes):
    """Fold conv/fc weights into lane-dense Pallas operators (runs once, numpy)."""
    folded = []
    cin = int(params["conv"][0][0].shape[2])
    h, w = H, W
    rp_in = _round_up(h + 2, 8)
    kp_in = _round_up((w + 2) * cin, 128)

    for (wconv, bconv) in params["conv"]:
        wnp = np.asarray(wconv, np.float32)           # HWIO (3, 3, C, Cout)
        bnp = np.asarray(bconv, np.float32)
        C, Cout = wnp.shape[2], wnp.shape[3]
        assert h % 2 == 0 and w % 2 == 0, "MaxPool2d floor mode: even dims only"
        h2, w2 = h // 2, w // 2
        rp_out = _round_up(h2 + 2, 8)
        kp_out = _round_up((w2 + 2) * Cout, 128)

        # Column operator (conv along W, column down-sample, re-pad), lane-concat
        # over the 6 (dh, a) combinations:
        #   wc[wi*C + c, dh*2+a, (1+j)*Cout + co] = w[dh, wi - 2j - a, c, co]
        wc = np.zeros((kp_in, 6, kp_out), np.float32)
        for dh in range(3):
            for a in range(2):
                k = dh * 2 + a
                for dw in range(3):
                    for j in range(w2):
                        wi = 2 * j + a + dw
                        wc[wi * C:(wi + 1) * C, k,
                           (1 + j) * Cout:(2 + j) * Cout] = wnp[dh, dw]
        wc = wc.reshape(kp_in, 6 * kp_out)

        # Row operator: routes conv row (2i + b + dh) -> output row 1+i, for both
        # pooling row-offsets b, summing over dh.  Output pad rows stay all-zero.
        ps = np.zeros((2, rp_out, 3, rp_in), np.float32)
        for bq in range(2):
            for dh in range(3):
                for i in range(h2):
                    ps[bq, 1 + i, dh, 2 * i + bq + dh] = 1.0
        ps = ps.reshape(2 * rp_out, 3 * rp_in)

        # Bias embedded in the padded output layout (zero on pad rows / pad lanes).
        b2d = np.zeros((rp_out, kp_out), np.float32)
        for j in range(w2):
            b2d[1:1 + h2, (1 + j) * Cout:(2 + j) * Cout] = bnp

        folded += [jnp.asarray(wc, jnp.bfloat16),
                   jnp.asarray(ps, jnp.float32),
                   jnp.asarray(b2d, jnp.float32)]
        h, w, cin, rp_in, kp_in = h2, w2, Cout, rp_out, kp_out

    # PyTorch's Linear(hidden_layers[-1], 10) implies a 1x1 final map, which also
    # makes NHWC-vs-NCHW flatten order immaterial.
    assert h == 1 and w == 1, "Linear(hidden_layers[-1], .) requires a 1x1 final map"
    ncls_pad = _round_up(num_classes, 128)
    wfc = np.zeros((kp_in, ncls_pad), np.float32)
    wfc[cin:2 * cin, :num_classes] = np.asarray(params["fc_w"], np.float32)
    bfc = np.zeros((1, ncls_pad), np.float32)
    bfc[0, :num_classes] = np.asarray(params["fc_b"], np.float32)
    folded += [jnp.asarray(wfc, jnp.bfloat16), jnp.asarray(bfc, jnp.float32)]
    return folded


def _prep_input(x_nchw, rp0, kp0):
    """(N, Cin, H, W) -> per-image padded layout (N, rp0, kp0), bf16."""
    x = jnp.transpose(x_nchw, (0, 2, 3, 1)).astype(jnp.float32)   # NHWC
    N, H, W, C = x.shape
    xp = jnp.pad(x, ((0, 0), (1, rp0 - (H + 1)), (1, 1), (0, 0)))
    m0 = xp.reshape(N, rp0, (W + 2) * C)
    m0 = jnp.pad(m0, ((0, 0), (0, 0), (0, kp0 - (W + 2) * C)))
    return m0.astype(jnp.bfloat16)


@functools.partial(jax.jit, static_argnames=("num_classes",))
def convnet_forward(x_nchw, folded, num_classes):
    """Full ConvNet forward in one fused Pallas kernel.  x_nchw: (N, Cin, H, W)."""
    N = x_nchw.shape[0]
    kp0 = folded[0].shape[0]            # first layer's wc_cat rows
    rp0 = folded[1].shape[1] // 3       # first layer's ps_big columns / 3
    rp_last, _ = folded[-3].shape       # last layer's b2d rows
    ncls_pad = folded[-1].shape[1]

    m0 = _prep_input(x_nchw, rp0, kp0)

    in_specs = [pl.BlockSpec((None, rp0, kp0), lambda n: (n, 0, 0))]
    # Batch-independent operators: constant index_map -> stay VMEM-resident.
    for a in folded:
        in_specs.append(pl.BlockSpec(a.shape, lambda n: (0, 0)))

    out = pl.pallas_call(
        _convnet_kernel,
        out_shape=jax.ShapeDtypeStruct((N, rp_last, ncls_pad), jnp.float32),
        grid=(N,),
        in_specs=in_specs,
        out_specs=pl.BlockSpec((None, rp_last, ncls_pad), lambda n: (n, 0, 0)),
        compiler_params=pltpu.CompilerParams(
            dimension_semantics=("parallel",)),
    )(m0, *folded)

    # Real feature row is row 1 of the padded slab; real logits in first 10 lanes.
    return out[:, 1, :num_classes]


# --------------------------- params / reference ----------------------------

def init_params(key, input_size, hidden_layers, num_classes):
    params = {"conv": []}
    cin = input_size
    for hdim in hidden_layers:
        key, k1, k2 = jax.random.split(key, 3)
        w = jax.random.normal(k1, (3, 3, cin, hdim), jnp.float32) * 0.1   # HWIO
        b = jax.random.normal(k2, (hdim,), jnp.float32) * 0.1
        params["conv"].append((w, b))
        cin = hdim
    key, k1, k2 = jax.random.split(key, 3)
    params["fc_w"] = jax.random.normal(k1, (cin, num_classes), jnp.float32) * 0.1
    params["fc_b"] = jax.random.normal(k2, (num_classes,), jnp.float32) * 0.1
    return params


def reference_forward(x_nchw, params):
    """Pure-JAX reference (eval mode, dropout = identity).

    Matches the kernel's numerics: bf16-rounded weights / inter-layer activations,
    f32 accumulation and f32 elementwise (bias, pool, ReLU).
    """
    x = jnp.transpose(x_nchw, (0, 2, 3, 1)).astype(jnp.bfloat16).astype(jnp.float32)
    for (w, b) in params["conv"]:
        w32 = w.astype(jnp.bfloat16).astype(jnp.float32)
        y = lax.conv_general_dilated(
            x, w32, window_strides=(1, 1), padding="SAME",
            dimension_numbers=("NHWC", "HWIO", "NHWC")) + b.astype(jnp.float32)
        y = lax.reduce_window(y, -jnp.inf, lax.max,
                              (1, 2, 2, 1), (1, 2, 2, 1), "VALID")
        x = jnp.maximum(y, 0.0).astype(jnp.bfloat16).astype(jnp.float32)
    x = x.reshape(x.shape[0], -1)
    fcw = params["fc_w"].astype(jnp.bfloat16).astype(jnp.float32)
    return x @ fcw + params["fc_b"].astype(jnp.float32)


# --------------------------------- main -------------------------------------

if __name__ == "__main__":
    input_size = 3
    hidden_layers = [8, 16, 16, 32]   # 16 -> 8 -> 4 -> 2 -> 1 spatial
    num_classes = 10

    key = jax.random.PRNGKey(0)
    key, kx = jax.random.split(key)
    x = jax.random.normal(kx, (2, input_size, 16, 16), jnp.float32)  # NCHW

    params = init_params(key, input_size, hidden_layers, num_classes)
    folded = fold_convnet_params(params, 16, 16, num_classes)        # one-time fold

    out = jax.block_until_ready(convnet_forward(x, folded, num_classes=num_classes))
    ref = jax.block_until_ready(reference_forward(x, params))

    np.testing.assert_allclose(np.asarray(out), np.asarray(ref),
                               rtol=1e-2, atol=1e-2)
    assert out.shape == (2, num_classes)
    print("KERNEL_OK")
</pallas_src>

<mosaic_0001>
module attributes {stable_mosaic.version = 11 : i64} {
  func.func @_convnet_kernel(%arg0: i32, %arg1: memref<1x24x128xbf16, #tpu.memory_space<vmem>>, %arg2: memref<128x768xbf16, #tpu.memory_space<vmem>>, %arg3: memref<32x72xf32, #tpu.memory_space<vmem>>, %arg4: memref<16x128xf32, #tpu.memory_space<vmem>>, %arg5: memref<128x768xbf16, #tpu.memory_space<vmem>>, %arg6: memref<16x48xf32, #tpu.memory_space<vmem>>, %arg7: memref<8x128xf32, #tpu.memory_space<vmem>>, %arg8: memref<128x768xbf16, #tpu.memory_space<vmem>>, %arg9: memref<16x24xf32, #tpu.memory_space<vmem>>, %arg10: memref<8x128xf32, #tpu.memory_space<vmem>>, %arg11: memref<128x768xbf16, #tpu.memory_space<vmem>>, %arg12: memref<16x24xf32, #tpu.memory_space<vmem>>, %arg13: memref<8x128xf32, #tpu.memory_space<vmem>>, %arg14: memref<128x128xbf16, #tpu.memory_space<vmem>>, %arg15: memref<1x128xf32, #tpu.memory_space<vmem>>, %arg16: memref<1x8x128xf32, #tpu.memory_space<vmem>>) attributes {dimension_semantics = [#tpu.dimension_semantics<parallel>], iteration_bounds = array<i64: 2>, scalar_prefetch = 0 : i64, scratch_operands = 0 : i64, tpu.core_type = #tpu.core_type<tc>, window_params = [{transform_indices = @transform_0, window_bounds = array<i64: 1, 24, 128>}, {pipeline_mode = #tpu.pipeline_mode<synchronous>, transform_indices = @transform_1, window_bounds = array<i64: 128, 768>}, {pipeline_mode = #tpu.pipeline_mode<synchronous>, transform_indices = @transform_2, window_bounds = array<i64: 32, 72>}, {pipeline_mode = #tpu.pipeline_mode<synchronous>, transform_indices = @transform_3, window_bounds = array<i64: 16, 128>}, {pipeline_mode = #tpu.pipeline_mode<synchronous>, transform_indices = @transform_4, window_bounds = array<i64: 128, 768>}, {pipeline_mode = #tpu.pipeline_mode<synchronous>, transform_indices = @transform_5, window_bounds = array<i64: 16, 48>}, {pipeline_mode = #tpu.pipeline_mode<synchronous>, transform_indices = @transform_6, window_bounds = array<i64: 8, 128>}, {pipeline_mode = #tpu.pipeline_mode<synchronous>, transform_indices = @transform_7, window_bounds = array<i64: 128, 768>}, {pipeline_mode = #tpu.pipeline_mode<synchronous>, transform_indices = @transform_8, window_bounds = array<i64: 16, 24>}, {pipeline_mode = #tpu.pipeline_mode<synchronous>, transform_indices = @transform_9, window_bounds = array<i64: 8, 128>}, {pipeline_mode = #tpu.pipeline_mode<synchronous>, transform_indices = @transform_10, window_bounds = array<i64: 128, 768>}, {pipeline_mode = #tpu.pipeline_mode<synchronous>, transform_indices = @transform_11, window_bounds = array<i64: 16, 24>}, {pipeline_mode = #tpu.pipeline_mode<synchronous>, transform_indices = @transform_12, window_bounds = array<i64: 8, 128>}, {pipeline_mode = #tpu.pipeline_mode<synchronous>, transform_indices = @transform_13, window_bounds = array<i64: 128, 128>}, {pipeline_mode = #tpu.pipeline_mode<synchronous>, transform_indices = @transform_14, window_bounds = array<i64: 1, 128>}, {transform_indices = @transform_15, window_bounds = array<i64: 1, 8, 128>}]} {
    %c0 = arith.constant 0 : index
    %c0_0 = arith.constant 0 : index
    %c0_1 = arith.constant 0 : index
    %0 = vector.load %arg1[%c0, %c0_0, %c0_1] : memref<1x24x128xbf16, #tpu.memory_space<vmem>>, vector<1x24x128xbf16>
    %1 = vector.shape_cast %0 : vector<1x24x128xbf16> to vector<24x128xbf16>
    %c0_2 = arith.constant 0 : index
    %c0_3 = arith.constant 0 : index
    %2 = vector.load %arg2[%c0_2, %c0_3] : memref<128x768xbf16, #tpu.memory_space<vmem>>, vector<128x768xbf16>
    %cst = arith.constant dense<0.000000e+00> : vector<24x768xf32>
    %3 = tpu.matmul %1, %2, %cst {dimension_numbers = #tpu.dot_dimension_numbers<[1], [0], [0], [1], [0, 0, 1, 1], [], []>} : vector<24x128xbf16>, vector<128x768xbf16>, vector<24x768xf32> -> vector<24x768xf32>
    %4 = vector.extract_strided_slice %3 {offsets = [0, 0], sizes = [24, 256], strides = [1, 1]} : vector<24x768xf32> to vector<24x256xf32>
    %5 = vector.extract_strided_slice %3 {offsets = [0, 256], sizes = [24, 256], strides = [1, 1]} : vector<24x768xf32> to vector<24x256xf32>
    %6 = vector.extract_strided_slice %3 {offsets = [0, 512], sizes = [24, 256], strides = [1, 1]} : vector<24x768xf32> to vector<24x256xf32>
    %7 = tpu.concatenate %4, %5, %6 in 0 : vector<24x256xf32>, vector<24x256xf32>, vector<24x256xf32> -> vector<72x256xf32>
    %c0_4 = arith.constant 0 : index
    %c0_5 = arith.constant 0 : index
    %8 = vector.load %arg3[%c0_4, %c0_5] : memref<32x72xf32, #tpu.memory_space<vmem>>, vector<32x72xf32>
    %cst_6 = arith.constant dense<0.000000e+00> : vector<32x256xf32>
    %9 = tpu.matmul %8, %7, %cst_6 {dimension_numbers = #tpu.dot_dimension_numbers<[1], [0], [0], [1], [0, 0, 1, 1], [], []>} : vector<32x72xf32>, vector<72x256xf32>, vector<32x256xf32> -> vector<32x256xf32>
    %10 = vector.extract_strided_slice %9 {offsets = [0, 0], sizes = [16, 128], strides = [1, 1]} : vector<32x256xf32> to vector<16x128xf32>
    %11 = vector.extract_strided_slice %9 {offsets = [0, 128], sizes = [16, 128], strides = [1, 1]} : vector<32x256xf32> to vector<16x128xf32>
    %12 = arith.maximumf %10, %11 : vector<16x128xf32>
    %13 = vector.extract_strided_slice %9 {offsets = [16, 0], sizes = [16, 128], strides = [1, 1]} : vector<32x256xf32> to vector<16x128xf32>
    %14 = vector.extract_strided_slice %9 {offsets = [16, 128], sizes = [16, 128], strides = [1, 1]} : vector<32x256xf32> to vector<16x128xf32>
    %15 = arith.maximumf %13, %14 : vector<16x128xf32>
    %16 = arith.maximumf %12, %15 : vector<16x128xf32>
    %c0_7 = arith.constant 0 : index
    %c0_8 = arith.constant 0 : index
    %17 = vector.load %arg4[%c0_7, %c0_8] : memref<16x128xf32, #tpu.memory_space<vmem>>, vector<16x128xf32>
    %18 = arith.addf %16, %17 : vector<16x128xf32>
    %cst_9 = arith.constant 0.000000e+00 : f32
    %19 = vector.broadcast %cst_9 : f32 to vector<16x128xf32>
    %20 = arith.maximumf %18, %19 : vector<16x128xf32>
    %21 = arith.truncf %20 : vector<16x128xf32> to vector<16x128xbf16>
    %c0_10 = arith.constant 0 : index
    %c0_11 = arith.constant 0 : index
    %22 = vector.load %arg5[%c0_10, %c0_11] : memref<128x768xbf16, #tpu.memory_space<vmem>>, vector<128x768xbf16>
    %cst_12 = arith.constant dense<0.000000e+00> : vector<16x768xf32>
    %23 = tpu.matmul %21, %22, %cst_12 {dimension_numbers = #tpu.dot_dimension_numbers<[1], [0], [0], [1], [0, 0, 1, 1], [], []>} : vector<16x128xbf16>, vector<128x768xbf16>, vector<16x768xf32> -> vector<16x768xf32>
    %24 = vector.extract_strided_slice %23 {offsets = [0, 0], sizes = [16, 256], strides = [1, 1]} : vector<16x768xf32> to vector<16x256xf32>
    %25 = vector.extract_strided_slice %23 {offsets = [0, 256], sizes = [16, 256], strides = [1, 1]} : vector<16x768xf32> to vector<16x256xf32>
    %26 = vector.extract_strided_slice %23 {offsets = [0, 512], sizes = [16, 256], strides = [1, 1]} : vector<16x768xf32> to vector<16x256xf32>
    %27 = tpu.concatenate %24, %25, %26 in 0 : vector<16x256xf32>, vector<16x256xf32>, vector<16x256xf32> -> vector<48x256xf32>
    %c0_13 = arith.constant 0 : index
    %c0_14 = arith.constant 0 : index
    %28 = vector.load %arg6[%c0_13, %c0_14] : memref<16x48xf32, #tpu.memory_space<vmem>>, vector<16x48xf32>
    %cst_15 = arith.constant dense<0.000000e+00> : vector<16x256xf32>
    %29 = tpu.matmul %28, %27, %cst_15 {dimension_numbers = #tpu.dot_dimension_numbers<[1], [0], [0], [1], [0, 0, 1, 1], [], []>} : vector<16x48xf32>, vector<48x256xf32>, vector<16x256xf32> -> vector<16x256xf32>
    %30 = vector.extract_strided_slice %29 {offsets = [0, 0], sizes = [8, 128], strides = [1, 1]} : vector<16x256xf32> to vector<8x128xf32>
    %31 = vector.extract_strided_slice %29 {offsets = [0, 128], sizes = [8, 128], strides = [1, 1]} : vector<16x256xf32> to vector<8x128xf32>
    %32 = arith.maximumf %30, %31 : vector<8x128xf32>
    %33 = vector.extract_strided_slice %29 {offsets = [8, 0], sizes = [8, 128], strides = [1, 1]} : vector<16x256xf32> to vector<8x128xf32>
    %34 = vector.extract_strided_slice %29 {offsets = [8, 128], sizes = [8, 128], strides = [1, 1]} : vector<16x256xf32> to vector<8x128xf32>
    %35 = arith.maximumf %33, %34 : vector<8x128xf32>
    %36 = arith.maximumf %32, %35 : vector<8x128xf32>
    %c0_16 = arith.constant 0 : index
    %c0_17 = arith.constant 0 : index
    %37 = vector.load %arg7[%c0_16, %c0_17] : memref<8x128xf32, #tpu.memory_space<vmem>>, vector<8x128xf32>
    %38 = arith.addf %36, %37 : vector<8x128xf32>
    %cst_18 = arith.constant 0.000000e+00 : f32
    %39 = vector.broadcast %cst_18 : f32 to vector<8x128xf32>
    %40 = arith.maximumf %38, %39 : vector<8x128xf32>
    %41 = arith.truncf %40 : vector<8x128xf32> to vector<8x128xbf16>
    %c0_19 = arith.constant 0 : index
    %c0_20 = arith.constant 0 : index
    %42 = vector.load %arg8[%c0_19, %c0_20] : memref<128x768xbf16, #tpu.memory_space<vmem>>, vector<128x768xbf16>
    %cst_21 = arith.constant dense<0.000000e+00> : vector<8x768xf32>
    %43 = tpu.matmul %41, %42, %cst_21 {dimension_numbers = #tpu.dot_dimension_numbers<[1], [0], [0], [1], [0, 0, 1, 1], [], []>} : vector<8x128xbf16>, vector<128x768xbf16>, vector<8x768xf32> -> vector<8x768xf32>
    %44 = vector.extract_strided_slice %43 {offsets = [0, 0], sizes = [8, 256], strides = [1, 1]} : vector<8x768xf32> to vector<8x256xf32>
    %45 = vector.extract_strided_slice %43 {offsets = [0, 256], sizes = [8, 256], strides = [1, 1]} : vector<8x768xf32> to vector<8x256xf32>
    %46 = vector.extract_strided_slice %43 {offsets = [0, 512], sizes = [8, 256], strides = [1, 1]} : vector<8x768xf32> to vector<8x256xf32>
    %47 = tpu.concatenate %44, %45, %46 in 0 : vector<8x256xf32>, vector<8x256xf32>, vector<8x256xf32> -> vector<24x256xf32>
    %c0_22 = arith.constant 0 : index
    %c0_23 = arith.constant 0 : index
    %48 = vector.load %arg9[%c0_22, %c0_23] : memref<16x24xf32, #tpu.memory_space<vmem>>, vector<16x24xf32>
    %cst_24 = arith.constant dense<0.000000e+00> : vector<16x256xf32>
    %49 = tpu.matmul %48, %47, %cst_24 {dimension_numbers = #tpu.dot_dimension_numbers<[1], [0], [0], [1], [0, 0, 1, 1], [], []>} : vector<16x24xf32>, vector<24x256xf32>, vector<16x256xf32> -> vector<16x256xf32>
    %50 = vector.extract_strided_slice %49 {offsets = [0, 0], sizes = [8, 128], strides = [1, 1]} : vector<16x256xf32> to vector<8x128xf32>
    %51 = vector.extract_strided_slice %49 {offsets = [0, 128], sizes = [8, 128], strides = [1, 1]} : vector<16x256xf32> to vector<8x128xf32>
    %52 = arith.maximumf %50, %51 : vector<8x128xf32>
    %53 = vector.extract_strided_slice %49 {offsets = [8, 0], sizes = [8, 128], strides = [1, 1]} : vector<16x256xf32> to vector<8x128xf32>
    %54 = vector.extract_strided_slice %49 {offsets = [8, 128], sizes = [8, 128], strides = [1, 1]} : vector<16x256xf32> to vector<8x128xf32>
    %55 = arith.maximumf %53, %54 : vector<8x128xf32>
    %56 = arith.maximumf %52, %55 : vector<8x128xf32>
    %c0_25 = arith.constant 0 : index
    %c0_26 = arith.constant 0 : index
    %57 = vector.load %arg10[%c0_25, %c0_26] : memref<8x128xf32, #tpu.memory_space<vmem>>, vector<8x128xf32>
    %58 = arith.addf %56, %57 : vector<8x128xf32>
    %cst_27 = arith.constant 0.000000e+00 : f32
    %59 = vector.broadcast %cst_27 : f32 to vector<8x128xf32>
    %60 = arith.maximumf %58, %59 : vector<8x128xf32>
    %61 = arith.truncf %60 : vector<8x128xf32> to vector<8x128xbf16>
    %c0_28 = arith.constant 0 : index
    %c0_29 = arith.constant 0 : index
    %62 = vector.load %arg11[%c0_28, %c0_29] : memref<128x768xbf16, #tpu.memory_space<vmem>>, vector<128x768xbf16>
    %cst_30 = arith.constant dense<0.000000e+00> : vector<8x768xf32>
    %63 = tpu.matmul %61, %62, %cst_30 {dimension_numbers = #tpu.dot_dimension_numbers<[1], [0], [0], [1], [0, 0, 1, 1], [], []>} : vector<8x128xbf16>, vector<128x768xbf16>, vector<8x768xf32> -> vector<8x768xf32>
    %64 = vector.extract_strided_slice %63 {offsets = [0, 0], sizes = [8, 256], strides = [1, 1]} : vector<8x768xf32> to vector<8x256xf32>
    %65 = vector.extract_strided_slice %63 {offsets = [0, 256], sizes = [8, 256], strides = [1, 1]} : vector<8x768xf32> to vector<8x256xf32>
    %66 = vector.extract_strided_slice %63 {offsets = [0, 512], sizes = [8, 256], strides = [1, 1]} : vector<8x768xf32> to vector<8x256xf32>
    %67 = tpu.concatenate %64, %65, %66 in 0 : vector<8x256xf32>, vector<8x256xf32>, vector<8x256xf32> -> vector<24x256xf32>
    %c0_31 = arith.constant 0 : index
    %c0_32 = arith.constant 0 : index
    %68 = vector.load %arg12[%c0_31, %c0_32] : memref<16x24xf32, #tpu.memory_space<vmem>>, vector<16x24xf32>
    %cst_33 = arith.constant dense<0.000000e+00> : vector<16x256xf32>
    %69 = tpu.matmul %68, %67, %cst_33 {dimension_numbers = #tpu.dot_dimension_numbers<[1], [0], [0], [1], [0, 0, 1, 1], [], []>} : vector<16x24xf32>, vector<24x256xf32>, vector<16x256xf32> -> vector<16x256xf32>
    %70 = vector.extract_strided_slice %69 {offsets = [0, 0], sizes = [8, 128], strides = [1, 1]} : vector<16x256xf32> to vector<8x128xf32>
    %71 = vector.extract_strided_slice %69 {offsets = [0, 128], sizes = [8, 128], strides = [1, 1]} : vector<16x256xf32> to vector<8x128xf32>
    %72 = arith.maximumf %70, %71 : vector<8x128xf32>
    %73 = vector.extract_strided_slice %69 {offsets = [8, 0], sizes = [8, 128], strides = [1, 1]} : vector<16x256xf32> to vector<8x128xf32>
    %74 = vector.extract_strided_slice %69 {offsets = [8, 128], sizes = [8, 128], strides = [1, 1]} : vector<16x256xf32> to vector<8x128xf32>
    %75 = arith.maximumf %73, %74 : vector<8x128xf32>
    %76 = arith.maximumf %72, %75 : vector<8x128xf32>
    %c0_34 = arith.constant 0 : index
    %c0_35 = arith.constant 0 : index
    %77 = vector.load %arg13[%c0_34, %c0_35] : memref<8x128xf32, #tpu.memory_space<vmem>>, vector<8x128xf32>
    %78 = arith.addf %76, %77 : vector<8x128xf32>
    %cst_36 = arith.constant 0.000000e+00 : f32
    %79 = vector.broadcast %cst_36 : f32 to vector<8x128xf32>
    %80 = arith.maximumf %78, %79 : vector<8x128xf32>
    %81 = arith.truncf %80 : vector<8x128xf32> to vector<8x128xbf16>
    %c0_37 = arith.constant 0 : index
    %c0_38 = arith.constant 0 : index
    %82 = vector.load %arg14[%c0_37, %c0_38] : memref<128x128xbf16, #tpu.memory_space<vmem>>, vector<128x128xbf16>
    %cst_39 = arith.constant dense<0.000000e+00> : vector<8x128xf32>
    %83 = tpu.matmul %81, %82, %cst_39 {dimension_numbers = #tpu.dot_dimension_numbers<[1], [0], [0], [1], [0, 0, 1, 1], [], []>} : vector<8x128xbf16>, vector<128x128xbf16>, vector<8x128xf32> -> vector<8x128xf32>
    %c0_40 = arith.constant 0 : index
    %c0_41 = arith.constant 0 : index
    %84 = vector.load %arg15[%c0_40, %c0_41] : memref<1x128xf32, #tpu.memory_space<vmem>>, vector<1x128xf32>
    %85 = vector.broadcast %84 : vector<1x128xf32> to vector<8x128xf32>
    %86 = arith.addf %83, %85 : vector<8x128xf32>
    %c0_42 = arith.constant 0 : index
    %c0_43 = arith.constant 0 : index
    %c0_44 = arith.constant 0 : index
    %87 = vector.load %arg16[%c0_42, %c0_43, %c0_44] : memref<1x8x128xf32, #tpu.memory_space<vmem>>, vector<1x8x128xf32>
    %88 = vector.shape_cast %87 : vector<1x8x128xf32> to vector<8x128xf32>
    %89 = vector.shape_cast %86 : vector<8x128xf32> to vector<1x8x128xf32>
    tpu.vector_store %arg16[%c0_42, %c0_43, %c0_44], %89 {strides = array<i32>} : memref<1x8x128xf32, #tpu.memory_space<vmem>>, vector<1x8x128xf32>,
    return
  }
  func.func @transform_0(%arg0: i32) -> (i32, i32, i32) {
    %c0_i32 = arith.constant 0 : i32
    %c0_i32_0 = arith.constant 0 : i32
    %c0_i32_1 = arith.constant 0 : i32
    return %arg0, %c0_i32, %c0_i32_0 : i32, i32, i32
  }
  func.func @transform_1(%arg0: i32) -> (i32, i32) {
    %c0_i32 = arith.constant 0 : i32
    %c0_i32_0 = arith.constant 0 : i32
    %c0_i32_1 = arith.constant 0 : i32
    return %c0_i32, %c0_i32_0 : i32, i32
  }
  func.func @transform_2(%arg0: i32) -> (i32, i32) {
    %c0_i32 = arith.constant 0 : i32
    %c0_i32_0 = arith.constant 0 : i32
    %c0_i32_1 = arith.constant 0 : i32
    return %c0_i32, %c0_i32_0 : i32, i32
  }
  func.func @transform_3(%arg0: i32) -> (i32, i32) {
    %c0_i32 = arith.constant 0 : i32
    %c0_i32_0 = arith.constant 0 : i32
    %c0_i32_1 = arith.constant 0 : i32
    return %c0_i32, %c0_i32_0 : i32, i32
  }
  func.func @transform_4(%arg0: i32) -> (i32, i32) {
    %c0_i32 = arith.constant 0 : i32
    %c0_i32_0 = arith.constant 0 : i32
    %c0_i32_1 = arith.constant 0 : i32
    return %c0_i32, %c0_i32_0 : i32, i32
  }
  func.func @transform_5(%arg0: i32) -> (i32, i32) {
    %c0_i32 = arith.constant 0 : i32
    %c0_i32_0 = arith.constant 0 : i32
    %c0_i32_1 = arith.constant 0 : i32
    return %c0_i32, %c0_i32_0 : i32, i32
  }
  func.func @transform_6(%arg0: i32) -> (i32, i32) {
    %c0_i32 = arith.constant 0 : i32
    %c0_i32_0 = arith.constant 0 : i32
    %c0_i32_1 = arith.constant 0 : i32
    return %c0_i32, %c0_i32_0 : i32, i32
  }
  func.func @transform_7(%arg0: i32) -> (i32, i32) {
    %c0_i32 = arith.constant 0 : i32
    %c0_i32_0 = arith.constant 0 : i32
    %c0_i32_1 = arith.constant 0 : i32
    return %c0_i32, %c0_i32_0 : i32, i32
  }
  func.func @transform_8(%arg0: i32) -> (i32, i32) {
    %c0_i32 = arith.constant 0 : i32
    %c0_i32_0 = arith.constant 0 : i32
    %c0_i32_1 = arith.constant 0 : i32
    return %c0_i32, %c0_i32_0 : i32, i32
  }
  func.func @transform_9(%arg0: i32) -> (i32, i32) {
    %c0_i32 = arith.constant 0 : i32
    %c0_i32_0 = arith.constant 0 : i32
    %c0_i32_1 = arith.constant 0 : i32
    return %c0_i32, %c0_i32_0 : i32, i32
  }
  func.func @transform_10(%arg0: i32) -> (i32, i32) {
    %c0_i32 = arith.constant 0 : i32
    %c0_i32_0 = arith.constant 0 : i32
    %c0_i32_1 = arith.constant 0 : i32
    return %c0_i32, %c0_i32_0 : i32, i32
  }
  func.func @transform_11(%arg0: i32) -> (i32, i32) {
    %c0_i32 = arith.constant 0 : i32
    %c0_i32_0 = arith.constant 0 : i32
    %c0_i32_1 = arith.constant 0 : i32
    return %c0_i32, %c0_i32_0 : i32, i32
  }
  func.func @transform_12(%arg0: i32) -> (i32, i32) {
    %c0_i32 = arith.constant 0 : i32
    %c0_i32_0 = arith.constant 0 : i32
    %c0_i32_1 = arith.constant 0 : i32
    return %c0_i32, %c0_i32_0 : i32, i32
  }
  func.func @transform_13(%arg0: i32) -> (i32, i32) {
    %c0_i32 = arith.constant 0 : i32
    %c0_i32_0 = arith.constant 0 : i32
    %c0_i32_1 = arith.constant 0 : i32
    return %c0_i32, %c0_i32_0 : i32, i32
  }
  func.func @transform_14(%arg0: i32) -> (i32, i32) {
    %c0_i32 = arith.constant 0 : i32
    %c0_i32_0 = arith.constant 0 : i32
    %c0_i32_1 = arith.constant 0 : i32
    return %c0_i32, %c0_i32_0 : i32, i32
  }
  func.func @transform_15(%arg0: i32) -> (i32, i32, i32) {
    %c0_i32 = arith.constant 0 : i32
    %c0_i32_0 = arith.constant 0 : i32
    %c0_i32_1 = arith.constant 0 : i32
    return %arg0, %c0_i32, %c0_i32_0 : i32, i32, i32
  }
}

</mosaic_0001>

<bundles_post_ra>
// kernel: convnet_forward.1
= control target key start
LH: loop header
LB: loop body
LE: loop exit
PB: predicated region body
PF: predicated region fallthrough
CT: control target
= control target key end

     0   :  { %s4389_s0 = inlined_call_operand.vmem [shape: bf16[2,24,128], index: 0, kind: input, shape index: {}]   ;;  %s4390_s1 = inlined_call_operand.vmem [shape: bf16[128,768], index: 1, kind: input, shape index: {}]   ;;  %s4391_s2 = inlined_call_operand.vmem [shape: f32[32,72], index: 2, kind: input, shape index: {}]   ;;  %s4392_s3 = inlined_call_operand.hbm [shape: f32[16,128], index: 3, kind: input, shape index: {}]   ;;  %s4393_s4 = inlined_call_operand.hbm [shape: bf16[128,768], index: 4, kind: input, shape index: {}]   ;;  %s4394_s5 = inlined_call_operand.hbm [shape: f32[16,48], index: 5, kind: input, shape index: {}]   ;;  %s4395_s6 = inlined_call_operand.hbm [shape: f32[8,128], index: 6, kind: input, shape index: {}]   ;;  %s4396_s7 = inlined_call_operand.hbm [shape: bf16[128,768], index: 7, kind: input, shape index: {}]   ;;  %s4397_s8 = inlined_call_operand.vmem [shape: f32[16,24], index: 8, kind: input, shape index: {}]   ;;  %s4398_s9 = inlined_call_operand.vmem [shape: f32[8,128], index: 9, kind: input, shape index: {}]   ;;  %s4399_s10 = inlined_call_operand.hbm [shape: bf16[128,768], index: 10, kind: input, shape index: {}]   ;;  %s4400_s11 = inlined_call_operand.hbm [shape: f32[16,24], index: 11, kind: input, shape index: {}]   ;;  %s4401_s12 = inlined_call_operand.vmem [shape: f32[8,128], index: 12, kind: input, shape index: {}]   ;;  %s4402_s13 = inlined_call_operand.vmem [shape: bf16[128,128], index: 13, kind: input, shape index: {}]   ;;  %s4403_s14 = inlined_call_operand.vmem [shape: f32[1,128], index: 14, kind: input, shape index: {}]   ;;  %s4404_s15 = inlined_call_operand.vmem [shape: f32[2,8,128], index: 15, kind: output, shape index: {}]  }
   0x1   :  { %4411 = sst [smem:[#allocation18_spill]] %s4393_s4 }
   0x2   :  { %4412 = sst [smem:[#allocation19_spill]] %s4401_s12 }
   0x3   :  { %4413 = sst [smem:[#allocation20_spill]] %s4402_s13 }
   0x4   :  { %4414 = sst [smem:[#allocation21_spill]] %s4403_s14 }
   0x5   :  { %4415 = sst [smem:[#allocation22_spill]] %s4404_s15 }
   0x6   :  { %20 = vsyncpa [#allocation3], 0 }
   0x7   :  { %21 = vsyncpa [#allocation5], 0 }
   0x8   :  { %22 = vsyncpa [#allocation8], 0 }
   0x9   :  { %23 = vsyncpa [#allocation11], 0  ;;  %s3918_s18 = smov 0  }
   0xa LB: > { %4416 = sst [smem:[#allocation17_spill]] %s3822_s18  ;;  %s3824_s19 = smov [#allocation4]   ;;  %s3822_s18 = sphi %s3918_s18, %s29_s18  }
   0xb   : > { %s411_s20 = sshll.u32 %s3824_s19, 4  ;;  %s3924_s21 = sadd.s32 4294967295, %s3822_s18   ;;  %s3929_s20 = int_to_ptr.vmem [resolvable:$true] %s411_s20 }
   0xc   : > { %p2920_p0 = scmp.ge.s32.totalorder %s3822_s18, 1  ;;  %p380_p1 = scmp.lt.s32.totalorder %s3822_s18, 3 }
   0xd   : > { %p4407_p2 = scmp.eq.s32.totalorder %s3924_s21, 0  ;;  %s3825_s23 = smov [#allocation7]  }
   0xe   : > { %p3931_p3 = pnand %p2920_p0, %p380_p1  ;;  %s438_s24 = sshll.u32 %s3825_s23, 4  ;;  %s3937_s24 = int_to_ptr.vmem [resolvable:$true] %s438_s24 }
   0xf   : > { %s3826_s26 = smov [#allocation10]   ;;  %s3827_s28 = smov [#allocation2]  }
  0x10   : > { %s4417_s22 = scalar_select %p3931_p3, 1, 0 }
  0x11   : > { %p3248_p4 = pneg %p3931_p3  ;;  %s467_s27 = sshll.u32 %s3826_s26, 4  ;;  %s3945_s27 = int_to_ptr.vmem [resolvable:$true] %s467_s27 }
  0x12   : > { %s3947_s29 = sshll.u32 %s3827_s28, 4  ;;  %s4419_s4 = sld [smem:[#allocation18_spill]]  ;;  %s399_s29 = int_to_ptr.vmem [resolvable:$true] %s3947_s29 }
  0x13   : > { %p3941_p5 = pnand %p4407_p2, %p3248_p4 }
  0x15   : > { %p3957_p7 = pneg %p3941_p5 }
  0x18   : > { %s3604_s17 = scalar_lea.hbm %s4419_s4, 6144 }
  0x19   : > { %p3605_p6 = scmp.ne.s32.totalorder %s4419_s4, %s3604_s17  ;;  %p3611_p10 = scmp.lt.u32.totalorder %s3604_s17, %s4419_s4 }
  0x1b   : > { %p3607_p8 = pnand %p3957_p7, %p3605_p6 }
  0x1d   : > { %p3608_p9 = pneg %p3607_p8 }
  0x1f   : > { %p3613_p11 = pnand %p3611_p10, %p3608_p9 }
  0x21   : > { %3616 = shalt.err (!%p3613_p11)
}
  0x22   : > { %s3617_s30 = scalar_lea.vmem %s3929_s20, 6144  ;;  %p3625_p1 = scmp.lt.s32.totalorder %s3929_s20, %s3929_s20 }
  0x23   : > { %p3618_p12 = scmp.ne.s32.totalorder %s3929_s20, %s3617_s30  ;;  %p3626_p4 = scmp.lt.s32.totalorder %s3617_s30, %s3617_s30 }
  0x25   : > { %p3620_p13 = pnand %p3618_p12, %p3957_p7  ;;  %p3627_p6 = por %p3626_p4, %p3625_p1 }
  0x27   : > { %p3621_p0 = pneg %p3620_p13 }
  0x29   : > { %p3628_p8 = pnand %p3627_p6, %p3621_p0 }
  0x2b   : > { %3631 = shalt.err (!%p3628_p8)
}
  0x2c   : > { %s4409_s16 = smov 384   ;;  %s4410_s17 = smov 24  }
  0x2d   : > { %3254 = dma.hbm_to_vmem [thread:$0]  (!%p3941_p5), %s4419_s4, 6144, %s3929_s20, [#allocation5], %s4409_s16, %s4409_s16, %s4410_s17  }
  0x2e   : > { %s3632_s30 = scalar_lea.hbm %s4395_s6, 128 }
  0x2f   : > { %p3633_p9 = scmp.ne.s32.totalorder %s4395_s6, %s3632_s30  ;;  %p3639_p12 = scmp.lt.u32.totalorder %s3632_s30, %s4395_s6 }
  0x31   : > { %p3635_p10 = pnand %p3633_p9, %p3957_p7 }
  0x33   : > { %p3636_p11 = pneg %p3635_p10 }
  0x35   : > { %p3641_p13 = pnand %p3639_p12, %p3636_p11 }
  0x37   : > { %3644 = shalt.err (!%p3641_p13)
}
  0x38   : > { %s3645_s20 = scalar_lea.vmem %s3937_s24, 128  ;;  %p3653_p6 = scmp.lt.s32.totalorder %s3937_s24, %s3937_s24 }
  0x39   : > { %p3646_p0 = scmp.ne.s32.totalorder %s3937_s24, %s3645_s20  ;;  %p3654_p8 = scmp.lt.s32.totalorder %s3645_s20, %s3645_s20 }
  0x3b   : > { %p3648_p1 = pnand %p3646_p0, %p3957_p7  ;;  %p3655_p9 = por %p3654_p8, %p3653_p6 }
  0x3d   : > { %p3649_p4 = pneg %p3648_p1 }
  0x3f   : > { %p3656_p10 = pnand %p3655_p9, %p3649_p4 }
  0x41   : > { %3659 = shalt.err (!%p3656_p10)
}
  0x42   : > { %3260 = dma.hbm_to_vmem [thread:$0]  (!%p3941_p5), %s4395_s6, 128, %s3937_s24, [#allocation8]  }
  0x43   : > { %s3660_s19 = scalar_lea.hbm %s4399_s10, 6144 }
  0x44   : > { %p3661_p11 = scmp.ne.s32.totalorder %s4399_s10, %s3660_s19  ;;  %p3667_p0 = scmp.lt.u32.totalorder %s3660_s19, %s4399_s10 }
  0x46   : > { %p3663_p12 = pnand %p3661_p11, %p3957_p7 }
  0x48   : > { %p3664_p13 = pneg %p3663_p12 }
  0x4a   : > { %p3669_p1 = pnand %p3667_p0, %p3664_p13 }
  0x4c   : > { %3672 = shalt.err (!%p3669_p1)
}
  0x4d   : > { %s3673_s24 = scalar_lea.vmem %s3945_s27, 6144  ;;  %p3681_p9 = scmp.lt.s32.totalorder %s3945_s27, %s3945_s27 }
  0x4e   : > { %p3674_p4 = scmp.ne.s32.totalorder %s3945_s27, %s3673_s24  ;;  %p3682_p10 = scmp.lt.s32.totalorder %s3673_s24, %s3673_s24 }
  0x50   : > { %p3676_p6 = pnand %p3674_p4, %p3957_p7  ;;  %p3683_p11 = por %p3682_p10, %p3681_p9 }
  0x52   : > { %p3677_p8 = pneg %p3676_p6 }
  0x54   : > { %p3684_p12 = pnand %p3683_p11, %p3677_p8 }
  0x56   : > { %3687 = shalt.err (!%p3684_p12)
}
  0x57   : > { %3266 = dma.hbm_to_vmem [thread:$0]  (!%p3941_p5), %s4399_s10, 6144, %s3945_s27, [#allocation11], %s4409_s16, %s4409_s16, %s4410_s17  }
  0x58   : > { %s3688_s15 = scalar_lea.hbm %s4392_s3, 256 }
  0x59   : > { %p3689_p13 = scmp.ne.s32.totalorder %s4392_s3, %s3688_s15  ;;  %p3695_p4 = scmp.lt.u32.totalorder %s3688_s15, %s4392_s3 }
  0x5b   : > { %p3691_p0 = pnand %p3689_p13, %p3957_p7 }
  0x5d   : > { %p3692_p1 = pneg %p3691_p0 }
  0x5f   : > { %p3697_p6 = pnand %p3695_p4, %p3692_p1 }
  0x61   : > { %3700 = shalt.err (!%p3697_p6)
}
  0x62   : > { %s3701_s30 = scalar_lea.vmem %s399_s29, 256  ;;  %p3709_p11 = scmp.lt.s32.totalorder %s399_s29, %s399_s29 }
  0x63   : > { %p3702_p8 = scmp.ne.s32.totalorder %s399_s29, %s3701_s30  ;;  %p3710_p12 = scmp.lt.s32.totalorder %s3701_s30, %s3701_s30 }
  0x65   : > { %p3704_p9 = pnand %p3702_p8, %p3957_p7  ;;  %p3711_p2 = por %p3710_p12, %p3709_p11 }
  0x67   : > { %p3705_p10 = pneg %p3704_p9 }
  0x69   : > { %p3712_p3 = pnand %p3711_p2, %p3705_p10 }
  0x6b   : > { %3715 = shalt.err (!%p3712_p3)
}
  0x6c   : > { %s3830_s27 = smov 128   ;;  %s3831_s24 = smov 8  }
  0x6d   : > { %3251 = dma.hbm_to_vmem [thread:$0]  (!%p3941_p5), %s4392_s3, 256, %s399_s29, [#allocation3], %s3830_s27, %s3830_s27, %s3831_s24  }
  0x6e   : > { %s3832_s13 = smov [#allocation6]   ;;  %s3833_s15 = smov [#allocation9]  }
  0x6f   : > { %s424_s14 = sshll.u32 %s3832_s13, 4  ;;  %s448_s19 = sshll.u32 %s3833_s15, 4  ;;  %s425_s14 = int_to_ptr.vmem [resolvable:$true] %s424_s14  ;;  %s449_s19 = int_to_ptr.vmem [resolvable:$true] %s448_s19 }
  0x70   : > { %s3716_s28 = scalar_lea.hbm %s4394_s5, 256 }
  0x71   : > { %p3717_p2 = scmp.ne.s32.totalorder %s4394_s5, %s3716_s28  ;;  %p3723_p0 = scmp.lt.u32.totalorder %s3716_s28, %s4394_s5 }
  0x73   : > { %p3719_p3 = pnand %p3717_p2, %p3957_p7 }
  0x75   : > { %p3720_p13 = pneg %p3719_p3 }
  0x77   : > { %p3725_p1 = pnand %p3723_p0, %p3720_p13 }
  0x79   : > { %3728 = shalt.err (!%p3725_p1)
}
  0x7a   : > { %s3729_s29 = scalar_lea.vmem %s425_s14, 256  ;;  %p3737_p9 = scmp.lt.s32.totalorder %s425_s14, %s425_s14 }
  0x7b   : > { %p3730_p4 = scmp.ne.s32.totalorder %s425_s14, %s3729_s29  ;;  %p3738_p10 = scmp.lt.s32.totalorder %s3729_s29, %s3729_s29 }
  0x7d   : > { %p3732_p6 = pnand %p3730_p4, %p3957_p7  ;;  %p3739_p11 = por %p3738_p10, %p3737_p9 }
  0x7f   : > { %p3733_p8 = pneg %p3732_p6 }
  0x81   : > { %p3740_p12 = pnand %p3739_p11, %p3733_p8 }
  0x83   : > { %3743 = shalt.err (!%p3740_p12)
}
  0x84   : > { %3257 = dma.hbm_to_vmem [thread:$0]  (!%p3941_p5), %s4394_s5, 256, %s425_s14, [#allocation5], %s3830_s27, %s3830_s27, %s3831_s24  }
  0x85   : > { %s3744_s12 = scalar_lea.hbm %s4396_s7, 6144 }
  0x86   : > { %p3745_p2 = scmp.ne.s32.totalorder %s4396_s7, %s3744_s12  ;;  %p3751_p0 = scmp.lt.u32.totalorder %s3744_s12, %s4396_s7 }
  0x88   : > { %p3747_p3 = pnand %p3745_p2, %p3957_p7 }
  0x8a   : > { %p3748_p13 = pneg %p3747_p3 }
  0x8c   : > { %p3753_p1 = pnand %p3751_p0, %p3748_p13 }
  0x8e   : > { %3756 = shalt.err (!%p3753_p1)
}
  0x8f   : > { %s3757_s28 = scalar_lea.vmem %s449_s19, 6144  ;;  %p3765_p9 = scmp.lt.s32.totalorder %s449_s19, %s449_s19 }
  0x90   : > { %p3758_p4 = scmp.ne.s32.totalorder %s449_s19, %s3757_s28  ;;  %p3766_p10 = scmp.lt.s32.totalorder %s3757_s28, %s3757_s28 }
  0x92   : > { %p3760_p6 = pnand %p3758_p4, %p3957_p7  ;;  %p3767_p11 = por %p3766_p10, %p3765_p9 }
  0x94   : > { %p3761_p8 = pneg %p3760_p6 }
  0x96   : > { %p3768_p12 = pnand %p3767_p11, %p3761_p8 }
  0x98   : > { %3771 = shalt.err (!%p3768_p12)
}
  0x99   : > { %s4421_s14 = smov 24   ;;  %s4422_s30 = smov 384  }
  0x9a   : > { %3263 = dma.hbm_to_vmem [thread:$0]  (!%p3941_p5), %s4396_s7, 6144, %s449_s19, [#allocation8], %s4422_s30, %s4422_s30, %s4421_s14  }
  0x9b   : > { %s3834_s16 = smov [#allocation12]   ;;  %s3772_s13 = scalar_lea.hbm %s4400_s11, 256 }
  0x9c   : > { %s480_s17 = sshll.u32 %s3834_s16, 4  ;;  %p3773_p2 = scmp.ne.s32.totalorder %s4400_s11, %s3772_s13  ;;  %s481_s17 = int_to_ptr.vmem [resolvable:$true] %s480_s17 }
  0x9d   : > { %p3779_p0 = scmp.lt.u32.totalorder %s3772_s13, %s4400_s11 }
  0x9e   : > { %p3775_p3 = pnand %p3773_p2, %p3957_p7 }
  0xa0   : > { %p3776_p13 = pneg %p3775_p3 }
  0xa2   : > { %p3781_p1 = pnand %p3779_p0, %p3776_p13 }
  0xa4   : > { %3784 = shalt.err (!%p3781_p1)
}
  0xa5   : > { %s3785_s19 = scalar_lea.vmem %s481_s17, 256  ;;  %p3793_p9 = scmp.lt.s32.totalorder %s481_s17, %s481_s17 }
  0xa6   : > { %p3786_p4 = scmp.ne.s32.totalorder %s481_s17, %s3785_s19  ;;  %p3794_p10 = scmp.lt.s32.totalorder %s3785_s19, %s3785_s19 }
  0xa8   : > { %p3788_p6 = pnand %p3786_p4, %p3957_p7  ;;  %p3795_p11 = por %p3794_p10, %p3793_p9 }
  0xaa   : > { %p3789_p8 = pneg %p3788_p6 }
  0xac   : > { %p3796_p12 = pnand %p3795_p11, %p3789_p8 }
  0xae   : > { %3799 = shalt.err (!%p3796_p12)
}
  0xaf   : > { %3269 = dma.hbm_to_vmem [thread:$0]  (!%p3941_p5), %s4400_s11, 256, %s481_s17, [#allocation11], %s3830_s27, %s3830_s27, %s3831_s24  }
  0xb0   : > { %p4423_p2 = scmp.ne.s32.totalorder %s4417_s22, 0 }
  0xb1   : > { %p4424_p7 = scmp.eq.s32.totalorder (!%p4423_p2), %s3924_s21, 0 }
  0xb2   : > { %513 = sbr.rel (%p4423_p2) target bundleno = 2363 (0x93b), region = 80 }
  0xb9   : > { %3805 = dma.done.wait (%p4424_p7), [#allocation3], 256   ;;  %p4425_p3 = pmov %p4424_p7 }
  0xbb   : > { %3807 = vsyncadd (%p4425_p3), [#allocation3], 4294967040  ;;  %p4426_p13 = pmov %p4425_p3 }
  0xbc   : > { %p4427_p0 = pmov %p4425_p3 }
  0xbd   : > { %3809 = dma.done.wait (%p4426_p13), [#allocation5], 6400  }
  0xbe   : > { %3811 = vsyncadd (%p4427_p0), [#allocation5], 4294960896  ;;  %p4428_p1 = pmov %p4427_p0 }
  0xbf   : > { %p4429_p5 = pmov %p4427_p0 }
  0xc0   : > { %3813 = dma.done.wait (%p4428_p1), [#allocation8], 6272  }
  0xc1   : > { %3815 = vsyncadd (%p4429_p5), [#allocation8], 4294961024  ;;  %p4430_p4 = pmov %p4427_p0 }
  0xc2   : > { %p4431_p6 = pmov %p4427_p0 }
  0xc3   : > { %3817 = dma.done.wait (%p4430_p4), [#allocation11], 6400  }
  0xc4   : > { %3819 = vsyncadd (%p4431_p6), [#allocation11], 4294960896  ;;  %v3835_v0 = vmov 0   ;;  %v3306_v1 = vld [vmem:[%s4390_s1 + $0x4] ss:$24 sps:$4 sm:$0xff]   ;;  %p584_p8 = scmp.lt.s32.totalorder %s3924_s21, 1 }
  0xc5   : > { %927 = vmatprep.mubr.bf16.mxu0 %v3835_v0  ;;  %978 = vmatprep.mubr.bf16.mxu1 %v3835_v0  ;;  %v3308_v2 = vld [vmem:[%s4390_s1] ss:$24 sps:$4 sm:$0xff]   ;;  %v3309_v3 = vld [vmem:[%s4390_s1 + $0x34] ss:$24 sps:$4 sm:$0xff]   ;;  %v3311_v4 = vld [vmem:[%s4390_s1 + $0x30] ss:$24 sps:$4 sm:$0xff]  }
  0xc6   : > { %895 = vmatprep.subr.bf16.mxu0 %v3306_v1  ;;  %v3312_v5 = vld [vmem:[%s4390_s1 + $0x64] ss:$24 sps:$4 sm:$0xff]   ;;  %v3320_v7 = vld [vmem:[%s4390_s1 + $0x8] ss:$24 sps:$4 sm:$0xff]   ;;  %v3315_v9 = vld [vmem:[%s4390_s1 + $0x94] ss:$24 sps:$4 sm:$0xff]  }
  0xc7   : > { %896 = vmatpush1.bf16.msra.mxu0 %v3308_v2  ;;  %v3317_v6 = vld [vmem:[%s4390_s1 + $0xc] ss:$24 sps:$4 sm:$0xff]   ;;  %v3314_v8 = vld [vmem:[%s4390_s1 + $0x60] ss:$24 sps:$4 sm:$0xff]   ;;  %v3323_v10 = vld [vmem:[%s4390_s1 + $0x3c] ss:$24 sps:$4 sm:$0xff]  }
  0xc8   : > { %897 = vmatprep.subr.bf16.mxu0 %v3309_v3  ;;  %946 = vmatprep.subr.bf16.mxu1 %v3317_v6  ;;  %s4438_s21 = smov (!%p584_p8, %s3924_s21), 1  ;;  %v3326_v11 = vld [vmem:[%s4390_s1 + $0x38] ss:$24 sps:$4 sm:$0xff]   ;;  %v3321_v13 = vld [vmem:[%s4390_s1 + $0xc4] ss:$24 sps:$4 sm:$0xff]   ;;  %v3836_v51 = vmov 0.0  }
  0xc9   : > { %947 = vmatpush1.bf16.msra.mxu1 %v3320_v7  ;;  %v3319_v12 = vld [vmem:[%s4390_s1 + $0x90] ss:$24 sps:$4 sm:$0xff]   ;;  %v3329_v14 = vld [vmem:[%s4390_s1 + $0x6c] ss:$24 sps:$4 sm:$0xff]   ;;  %s3219_s13 = smul.u32 12, %s4438_s21  ;;  %vm1052_vm0 = vcmask 588800  }
  0xca   : > { %948 = vmatprep.subr.bf16.mxu1 %v3323_v10  ;;  %v3332_v15 = vld [vmem:[%s4390_s1 + $0x68] ss:$24 sps:$4 sm:$0xff]   ;;  %v3335_v16 = vld [vmem:[%s4390_s1 + $0x9c] ss:$24 sps:$4 sm:$0xff]   ;;  %v3338_v19 = vld [vmem:[%s4390_s1 + $0x98] ss:$24 sps:$4 sm:$0xff]  }
  0xcb   : > { %898 = vmatpush1.bf16.msra.mxu0 %v3311_v4  ;;  %v3325_v17 = vld [vmem:[%s4390_s1 + $0xc0] ss:$24 sps:$4 sm:$0xff]   ;;  %v3327_v18 = vld [vmem:[%s4390_s1 + $0xf4] ss:$24 sps:$4 sm:$0xff]   ;;  %s4200_s27 = scalar_lea.vmem %s4389_s0, %s3219_s13  ;;  %v3331_v21 = vld [vmem:[%s4390_s1 + $0xf0] ss:$24 sps:$4 sm:$0xff]  }
  0xcc   : > { %899 = vmatprep.subr.bf16.mxu0 %v3312_v5  ;;  %v3341_v20 = vld [vmem:[%s4390_s1 + $0xcc] ss:$24 sps:$4 sm:$0xff]   ;;  %v3344_v23 = vld [vmem:[%s4390_s1 + $0xc8] ss:$24 sps:$4 sm:$0xff]   ;;  %v3346_v24 = vld [vmem:[%s4390_s1 + $0xfc] ss:$24 sps:$4 sm:$0xff]  }
  0xcd   : > { %949 = vmatpush1.bf16.msra.mxu1 %v3326_v11  ;;  %v3333_v22 = vld [vmem:[%s4390_s1 + $0x124] ss:$24 sps:$4 sm:$0xff]   ;;  %v3337_v25 = vld [vmem:[%s4390_s1 + $0x120] ss:$24 sps:$4 sm:$0xff]   ;;  %v3339_v26 = vld [vmem:[%s4390_s1 + $0x154] ss:$24 sps:$4 sm:$0xff]  }
  0xce   : > { %950 = vmatprep.subr.bf16.mxu1 %v3329_v14  ;;  %v3351_v27 = vld [vmem:[%s4390_s1 + $0xf8] ss:$24 sps:$4 sm:$0xff]   ;;  %v3352_v28 = vld [vmem:[%s4390_s1 + $0x12c] ss:$24 sps:$4 sm:$0xff]   ;;  %v3357_v31 = vld [vmem:[%s4390_s1 + $0x128] ss:$24 sps:$4 sm:$0xff]  }
  0xcf   : > { %900 = vmatpush1.bf16.msra.mxu0 %v3314_v8  ;;  %v3343_v29 = vld [vmem:[%s4390_s1 + $0x150] ss:$24 sps:$4 sm:$0xff]   ;;  %v3350_v30 = vld [vmem:[%s4390_s1 + $0x14] ss:$24 sps:$4 sm:$0xff]   ;;  %v3345_v33 = vld [vmem:[%s4200_s27] sm:$0xff]   ;;  %vm1586_vm1 = vcmask 392192  }
  0xd0   : > { %901 = vmatprep.subr.bf16.mxu0 %v3315_v9  ;;  %v3358_v32 = vld [vmem:[%s4390_s1 + $0x15c] ss:$24 sps:$4 sm:$0xff]   ;;  %v3348_v34 = vld [vmem:[%s4390_s1 + $0x10] ss:$24 sps:$4 sm:$0xff]   ;;  %v3354_v37 = vld [vmem:[%s4390_s1 + $0x40] ss:$24 sps:$4 sm:$0xff]  }
  0xd1   : > { %951 = vmatpush1.bf16.msra.mxu1 %v3332_v15  ;;  %v3356_v35 = vld [vmem:[%s4390_s1 + $0x44] ss:$24 sps:$4 sm:$0xff]   ;;  %v3363_v36 = vld [vmem:[%s4390_s1 + $0x158] ss:$24 sps:$4 sm:$0xff]   ;;  %v3362_v38 = vld [vmem:[%s4390_s1 + $0x74] ss:$24 sps:$4 sm:$0xff]  }
  0xd2   : > { %952 = vmatprep.subr.bf16.mxu1 %v3335_v16  ;;  %v3367_v39 = vld [vmem:[%s4200_s27 + $0x8] ss:$0 sps:$4 sm:$0xff]   ;;  %v3366_v41 = vld [vmem:[%s4390_s1 + $0xa4] ss:$24 sps:$4 sm:$0xff]   ;;  %v3364_v42 = vld [vmem:[%s4390_s1 + $0xa0] ss:$24 sps:$4 sm:$0xff]  }
  0xd3   : > { %902 = vmatpush1.bf16.msra.mxu0 %v3319_v12  ;;  %v3360_v40 = vld [vmem:[%s4390_s1 + $0x70] ss:$24 sps:$4 sm:$0xff]   ;;  %v3370_v43 = vld [vmem:[%s4390_s1 + $0xd4] ss:$24 sps:$4 sm:$0xff]   ;;  %v3373_v45 = vld [vmem:[%s4390_s1 + $0x104] ss:$24 sps:$4 sm:$0xff]  }
  0xd4   : > { %903 = vmatprep.subr.bf16.mxu0 %v3321_v13  ;;  %v3368_v44 = vld [vmem:[%s4390_s1 + $0xd0] ss:$24 sps:$4 sm:$0xff]   ;;  %v3371_v46 = vld [vmem:[%s4390_s1 + $0x100] ss:$24 sps:$4 sm:$0xff]   ;;  %v3376_v47 = vld [vmem:[%s4390_s1 + $0x134] ss:$24 sps:$4 sm:$0xff]  }
  0xd5   : > { %953 = vmatpush1.bf16.msra.mxu1 %v3338_v19  ;;  %v3374_v48 = vld [vmem:[%s4390_s1 + $0x130] ss:$24 sps:$4 sm:$0xff]   ;;  %v3379_v49 = vld [vmem:[%s4390_s1 + $0x164] ss:$24 sps:$4 sm:$0xff]   ;;  %v3377_v50 = vld [vmem:[%s4390_s1 + $0x160] ss:$24 sps:$4 sm:$0xff]  }
  0xd6   : > { %954 = vmatprep.subr.bf16.mxu1 %v3341_v20  ;;  %v3383_v52 = vld [vmem:[#allocation4 + $0x8] ss:$24 sps:$4 sm:$0xff]   ;;  %v3385_v53 = vld [vmem:[#allocation4 + $0xc] ss:$24 sps:$4 sm:$0xff]   ;;  %v3391_v54 = vld [vmem:[#allocation4 + $0x3c] ss:$24 sps:$4 sm:$0xff]  }
  0xd7   : > { %904 = vmatpush1.bf16.msra.mxu0 %v3325_v17  ;;  %v3389_v55 = vld [vmem:[#allocation4 + $0x38] ss:$24 sps:$4 sm:$0xff]   ;;  %vm2090_vm2 = vcmask 195584   ;;  %s4432_s24 = sld [smem:[#allocation20_spill]]  ;;  %vm3837_vm3 = vmmov 0   ;;  %s4433_s22 = sld [smem:[#allocation19_spill]] }
  0xd8   : > { %905 = vmatprep.subr.bf16.mxu0 %v3327_v18  ;;  %s2938_s25 = sshll.u32 %s4438_s21, 3  ;;  %s4434_s16 = sld [smem:[#allocation21_spill]] }
  0xd9   : > { %955 = vmatpush1.bf16.msra.mxu1 %v3344_v23  ;;  %s4435_s12 = sld [smem:[#allocation22_spill]] }
  0xda   : > { %956 = vmatprep.subr.bf16.mxu1 %v3346_v24  ;;  %v1048_v24 = vld [vmem:[%s4391_s2] sm:$0xff] }
  0xdb   : > { %906 = vmatpush1.bf16.msra.mxu0 %v3331_v21 }
  0xdc   : > { %907 = vmatprep.subr.bf16.mxu0 %v3333_v22  ;;  %v3382_v22 = vld [vmem:[#allocation4 + $0x4] ss:$24 sps:$4 sm:$0xff]  }
  0xdd   : > { %957 = vmatpush1.bf16.msra.mxu1 %v3351_v27  ;;  %v3388_v27 = vld [vmem:[#allocation4 + $0x34] ss:$24 sps:$4 sm:$0xff]  }
  0xde   : > { %958 = vmatprep.subr.bf16.mxu1 %v3352_v28 }
  0xdf   : > { %908 = vmatpush1.bf16.msra.mxu0 %v3337_v25  ;;  %v3380_v25 = vld [vmem:[#allocation4] ss:$24 sps:$4 sm:$0xff]   ;;  %s592_s27 = scalar_lea.vmem %s4435_s12, %s2938_s25 }
  0xe0   : > { %909 = vmatprep.subr.bf16.mxu0 %v3339_v26 }
  0xe1   : > { %959 = vmatpush1.bf16.msra.mxu1 %v3357_v31  ;;  %v3394_v31 = vld [vmem:[#allocation4 + $0x64] ss:$24 sps:$4 sm:$0xff]  }
  0xe2   : > { %960 = vmatprep.subr.bf16.mxu1 %v3358_v32  ;;  %v1050_v32 = vld [vmem:[%s4391_s2 + $0x10] sm:$0xff] }
  0xe3   : > { %910 = vmatpush1.bf16.msra.mxu0 %v3343_v29  ;;  %v1049_v29 = vld [vmem:[%s4391_s2 + $0x8] sm:$0xff] }
  0xe4   : > { %997 = vmatprep.subr.bf16.mxu0 %v3350_v30  ;;  %v3386_v30 = vld [vmem:[#allocation4 + $0x30] ss:$24 sps:$4 sm:$0xff]  }
  0xe5   : > { %961 = vmatpush1.bf16.msra.mxu1 %v3363_v36  ;;  %v3395_v36 = vld [vmem:[#allocation4 + $0x68] ss:$24 sps:$4 sm:$0xff]  }
  0xe6   : > { %928 = vmatmul.mubr.bf16.vlgmr.msra.gmra.mrb[0].mxu0 %v3345_v33 }
  0xe7   : > { %998 = vmatpush1.bf16.msra.mxu0 %v3348_v34  ;;  %937 = vmatprep.mubr.bf16.mxu0 %v3835_v0  ;;  %v1051_v34 = vld [vmem:[%s4391_s2 + $0x18] sm:$0xff] }
  0xe8   : > { %999 = vmatprep.subr.bf16.mxu0 %v3356_v35  ;;  %979 = vmatmul.mubr.bf16.vlgmr.msra.gmra.mrb[0].mxu1 %v3345_v33  ;;  %v3397_v35 = vld [vmem:[#allocation4 + $0x6c] ss:$24 sps:$4 sm:$0xff]  }
  0xe9   : > { %988 = vmatprep.mubr.bf16.mxu1 %v3835_v0 }
  0xeb   : > { %1000 = vmatpush1.bf16.msra.mxu0 %v3354_v37  ;;  %v3400_v37 = vld [vmem:[#allocation4 + $0x94] ss:$24 sps:$4 sm:$0xff]  }
  0xec   : > { %1001 = vmatprep.subr.bf16.mxu0 %v3362_v38  ;;  %v3398_v38 = vld [vmem:[#allocation4 + $0x90] ss:$24 sps:$4 sm:$0xff]  }
  0xee   : > { %938 = vmatmul.mubr.bf16.gmra.mrb[4].mxu0 %v3367_v39 }
  0xef   : > { %1002 = vmatpush1.bf16.msra.mxu0 %v3360_v40  ;;  %1029 = vmatprep.mubr.bf16.mxu0 %v3835_v0  ;;  %v3401_v40 = vld [vmem:[#allocation4 + $0x98] ss:$24 sps:$4 sm:$0xff]  }
  0xf0   : > { %1003 = vmatprep.subr.bf16.mxu0 %v3366_v41  ;;  %989 = vmatmul.mubr.bf16.gmra.mrb[4].mxu1 %v3367_v39  ;;  %v3406_v41 = vld [vmem:[#allocation4 + $0xc4] ss:$24 sps:$4 sm:$0xff]  }
  0xf1   : > { %1129 = vmatprep.mubr.f32.mxu1 %v3836_v51 }
  0xf3   : > { %1004 = vmatpush1.bf16.msra.mxu0 %v3364_v42  ;;  %v3404_v42 = vld [vmem:[#allocation4 + $0xc0] ss:$24 sps:$4 sm:$0xff]  }
  0xf4   : > { %1005 = vmatprep.subr.bf16.mxu0 %v3370_v43  ;;  %v3409_v43 = vld [vmem:[#allocation4 + $0xcc] ss:$24 sps:$4 sm:$0xff]  }
  0xf7   : > { %1006 = vmatpush1.bf16.msra.mxu0 %v3368_v44  ;;  %v3407_v44 = vld [vmem:[#allocation4 + $0xc8] ss:$24 sps:$4 sm:$0xff]  }
  0xf8   : > { %1007 = vmatprep.subr.bf16.mxu0 %v3373_v45  ;;  %v3412_v45 = vld [vmem:[#allocation4 + $0xf4] ss:$24 sps:$4 sm:$0xff]  }
  0xfb   : > { %1008 = vmatpush1.bf16.msra.mxu0 %v3371_v46  ;;  %v3410_v46 = vld [vmem:[#allocation4 + $0xf0] ss:$24 sps:$4 sm:$0xff]  }
  0xfc   : > { %1009 = vmatprep.subr.bf16.mxu0 %v3376_v47  ;;  %v3415_v47 = vld [vmem:[#allocation4 + $0xfc] ss:$24 sps:$4 sm:$0xff]  }
  0xff   : > { %1010 = vmatpush1.bf16.msra.mxu0 %v3374_v48  ;;  %v3413_v48 = vld [vmem:[#allocation4 + $0xf8] ss:$24 sps:$4 sm:$0xff]  }
 0x100   : > { %1011 = vmatprep.subr.bf16.mxu0 %v3379_v49  ;;  %v3418_v49 = vld [vmem:[#allocation4 + $0x124] ss:$24 sps:$4 sm:$0xff]  }
 0x103   : > { %1012 = vmatpush1.bf16.msra.mxu0 %v3377_v50  ;;  %v3416_v50 = vld [vmem:[#allocation4 + $0x120] ss:$24 sps:$4 sm:$0xff]  }
 0x104   : > { %1498 = vmatprep.subr.bf16.mxu0 %v3385_v53  ;;  %v3419_v53 = vld [vmem:[#allocation4 + $0x128] ss:$24 sps:$4 sm:$0xff]  }
 0x106   : > { %1030 = vmatmul.mubr.bf16.vlgmr.msra.gmra.mrb[8].mxu0 %v3345_v33  ;;  %v3392_v33 = vld [vmem:[#allocation4 + $0x60] ss:$24 sps:$4 sm:$0xff]  }
 0x107   : > { %1039 = vmatprep.mubr.bf16.mxu0 %v3835_v0  ;;  %1499 = vmatpush1.bf16.msra.mxu0 %v3383_v52  ;;  %v3421_v52 = vld [vmem:[#allocation4 + $0x12c] ss:$24 sps:$4 sm:$0xff]  }
 0x108   : > { %1500 = vmatprep.subr.bf16.mxu0 %v3391_v54  ;;  %v3424_v54 = vld [vmem:[#allocation4 + $0x154] ss:$24 sps:$4 sm:$0xff]  }
 0x10b   : > { %1501 = vmatpush1.bf16.msra.mxu0 %v3389_v55  ;;  %v3422_v55 = vld [vmem:[#allocation4 + $0x150] ss:$24 sps:$4 sm:$0xff]  }
 0x10c   : > { %1502 = vmatprep.subr.bf16.mxu0 %v3397_v35  ;;  %v3458_v35 = vld [vmem:[#allocation9 + $0x30] ss:$24 sps:$4 sm:$0xff]  }
 0x10e   : > { %1040 = vmatmul.mubr.bf16.gmra.mrb[12].mxu0 %v3367_v39  ;;  %v3403_v39 = vld [vmem:[#allocation4 + $0x9c] ss:$24 sps:$4 sm:$0xff]  }
 0x10f   : > { %1530 = vmatprep.mubr.bf16.mxu0 %v3835_v0  ;;  %1503 = vmatpush1.bf16.msra.mxu0 %v3395_v36  ;;  %v3466_v36 = vld [vmem:[#allocation9 + $0x64] ss:$24 sps:$4 sm:$0xff]  }
 0x110   : > { %1504 = vmatprep.subr.bf16.mxu0 %v3403_v39  ;;  %v3470_v39 = vld [vmem:[#allocation9 + $0x90] ss:$24 sps:$4 sm:$0xff]  }
 0x113   : > { %1505 = vmatpush1.bf16.msra.mxu0 %v3401_v40  ;;  %v3478_v40 = vld [vmem:[#allocation9 + $0xc4] ss:$24 sps:$4 sm:$0xff]  }
 0x114   : > { %1506 = vmatprep.subr.bf16.mxu0 %v3409_v43 }
 0x117   : > { %1507 = vmatpush1.bf16.msra.mxu0 %v3407_v44 }
 0x118   : > { %1508 = vmatprep.subr.bf16.mxu0 %v3415_v47 }
 0x11b   : > { %1509 = vmatpush1.bf16.msra.mxu0 %v3413_v48 }
 0x11c   : > { %1510 = vmatprep.subr.bf16.mxu0 %v3421_v52 }
 0x11f   : > { %1511 = vmatpush1.bf16.msra.mxu0 %v3419_v53 }
 0x1b9   : > { %v929_v56 = vpop.f32.mrb[0].mxu0 }
 0x1ba   : > { %v931_v57 = vpop.f32.mrb[1].mxu0 }
 0x1bb   : > { %v933_v58 = vpop.f32.mrb[2].mxu0  ;;  %v980_v62 = vpop.f32.mrb[0].mxu1 }
 0x1bc   : > { %v3185_v59 = vpack.c.bf16 %v933_v58, %v929_v56  ;;  %v935_v60 = vpop.f32.mrb[3].mxu0  ;;  %v982_v63 = vpop.f32.mrb[1].mxu1  ;;  %v3427_v56 = vld [vmem:[#allocation4 + $0x15c] ss:$24 sps:$4 sm:$0xff]  }
 0x1bd   : > { %v3183_v61 = vpack.c.bf16 %v935_v60, %v931_v57  ;;  %v984_v1 = vpop.f32.mrb[2].mxu1  ;;  %v3425_v57 = vld [vmem:[#allocation4 + $0x158] ss:$24 sps:$4 sm:$0xff]   ;;  %1512 = vmatprep.subr.bf16.mxu0 %v3427_v56  ;;  %v3430_v58 = vld [vmem:[#allocation4 + $0x14] ss:$24 sps:$4 sm:$0xff]  }
 0x1be   : > { %v986_v3 = vpop.f32.mrb[3].mxu1  ;;  %1513 = vmatpush1.bf16.msra.mxu0 %v3425_v57 }
 0x1bf   : > { %3184 = vmatprep.subr.bf16.mxu1 %v3183_v61 }
 0x1c0   : > { %3186 = vmatpush1.bf16.msra.mxu1 %v3185_v59 }
 0x1c1   : > { %v939_v2 = vpop.f32.mrb[4].mxu0 }
 0x1c2   : > { %v3189_v4 = vpack.c.bf16 %v980_v62, %v939_v2  ;;  %v941_v5 = vpop.f32.mrb[5].mxu0 }
 0x1c3   : > { %v3187_v6 = vpack.c.bf16 %v982_v63, %v941_v5  ;;  %v943_v7 = vpop.f32.mrb[6].mxu0  ;;  %v990_v9 = vpop.f32.mrb[4].mxu1 }
 0x1c4   : > { %v944_v8 = vpop.f32.mrb[7].mxu0  ;;  %v3193_v10 = vpack.c.bf16 %v990_v9, %v984_v1  ;;  %v992_v11 = vpop.f32.mrb[5].mxu1  ;;  %v1160_v7 = vld [vmem:[#allocation2] sm:$0xff] }
 0x1c5   : > { %3188 = vmatprep.subr.bf16.mxu1 %v3187_v6  ;;  %v3191_v12 = vpack.c.bf16 %v992_v11, %v986_v3  ;;  %v994_v13 = vpop.f32.mrb[6].mxu1 }
 0x1c6   : > { %3190 = vmatpush1.bf16.msra.mxu1 %v3189_v4  ;;  %v995_v14 = vpop.f32.mrb[7].mxu1 }
 0x1c7   : > { %3192 = vmatprep.subr.bf16.mxu1 %v3191_v12 }
 0x1ca   : > { %3194 = vmatpush1.bf16.msra.mxu1 %v3193_v10  ;;  %v1161_v10 = vld [vmem:[#allocation2 + $0x8] sm:$0xff] }
 0x1d9   : > { %v1031_v15 = vpop.f32.mrb[8].mxu0 }
 0x1da   : > { %v1033_v16 = vpop.f32.mrb[9].mxu0 }
 0x1db   : > { %v1035_v17 = vpop.f32.mrb[10].mxu0 }
 0x1dc   : > { %v3197_v18 = vpack.c.bf16 %v1035_v17, %v1031_v15  ;;  %v1037_v19 = vpop.f32.mrb[11].mxu0 }
 0x1dd   : > { %v3195_v20 = vpack.c.bf16 %v1037_v19, %v1033_v16  ;;  %v3428_v16 = vld [vmem:[#allocation4 + $0x10] ss:$24 sps:$4 sm:$0xff]   ;;  %v3431_v19 = vld [vmem:[#allocation4 + $0x40] ss:$24 sps:$4 sm:$0xff]  }
 0x1df   : > { %3196 = vmatprep.subr.bf16.mxu1 %v3195_v20  ;;  %v3436_v20 = vld [vmem:[#allocation4 + $0x74] ss:$24 sps:$4 sm:$0xff]  }
 0x1e0   : > { %3198 = vmatpush1.bf16.msra.mxu1 %v3197_v18  ;;  %v3433_v18 = vld [vmem:[#allocation4 + $0x44] ss:$24 sps:$4 sm:$0xff]  }
 0x1e1   : > { %v1041_v21 = vpop.f32.mrb[12].mxu0 }
 0x1e2   : > { %v1043_v23 = vpop.f32.mrb[13].mxu0 }
 0x1e3   : > { %v1045_v26 = vpop.f32.mrb[14].mxu0  ;;  %1081 = vmatprep.subr.mxu1 %v1043_v23  ;;  %v3437_v23 = vld [vmem:[#allocation4 + $0xa0] ss:$24 sps:$4 sm:$0xff]  }
 0x1e4   : > { %v1046_v28 = vpop.f32.mrb[15].mxu0  ;;  %1082 = vmatpush1.msra.mxu1 %v1041_v21  ;;  %v3434_v21 = vld [vmem:[#allocation4 + $0x70] ss:$24 sps:$4 sm:$0xff]   ;;  %v3445_v26 = vld [vmem:[#allocation4 + $0x104] ss:$24 sps:$4 sm:$0xff]  }
 0x1e5   : > { %2989 = vmatmul.mubr.msk.f32.vlgmr.msra.gmra.mrb[8].mxu1 %vm1052_vm0, %v1048_v24  ;;  %1455 = vmatprep.subr.bf16.mxu1 %v3382_v22  ;;  %v3439_v22 = vld [vmem:[#allocation4 + $0xa4] ss:$24 sps:$4 sm:$0xff]   ;;  %v3442_v24 = vld [vmem:[#allocation4 + $0xd4] ss:$24 sps:$4 sm:$0xff]  }
 0x1e6   : > { %1135 = vmatprep.mubr.f32.mxu1 %v3836_v51  ;;  %1456 = vmatpush1.bf16.msra.mxu1 %v3380_v25  ;;  %v3440_v25 = vld [vmem:[#allocation4 + $0xd0] ss:$24 sps:$4 sm:$0xff]   ;;  %v3448_v28 = vld [vmem:[#allocation4 + $0x134] ss:$24 sps:$4 sm:$0xff]  }
 0x1e7   : > { %1457 = vmatprep.subr.bf16.mxu1 %v3388_v27  ;;  %v3443_v27 = vld [vmem:[#allocation4 + $0x100] ss:$24 sps:$4 sm:$0xff]  }
 0x1e9   : > { %2990 = vmatmul.mubr.msk.f32.gmra.mrb[10].mxu1 %vm1052_vm0, %v1049_v29  ;;  %v3446_v29 = vld [vmem:[#allocation4 + $0x130] ss:$24 sps:$4 sm:$0xff]  }
 0x1ea   : > { %1141 = vmatprep.mubr.f32.mxu1 %v3836_v51  ;;  %1458 = vmatpush1.bf16.msra.mxu1 %v3386_v30  ;;  %v3451_v30 = vld [vmem:[#allocation4 + $0x164] ss:$24 sps:$4 sm:$0xff]  }
 0x1eb   : > { %1459 = vmatprep.subr.bf16.mxu1 %v3394_v31  ;;  %v3449_v31 = vld [vmem:[#allocation4 + $0x160] ss:$24 sps:$4 sm:$0xff]  }
 0x1ed   : > { %2991 = vmatmul.mubr.msk.f32.gmra.mrb[12].mxu1 %vm1052_vm0, %v1050_v32  ;;  %v3452_v32 = vld [vmem:[#allocation9] ss:$24 sps:$4 sm:$0xff]  }
 0x1ee   : > { %1147 = vmatprep.mubr.f32.mxu1 %v3836_v51  ;;  %1460 = vmatpush1.bf16.msra.mxu1 %v3392_v33  ;;  %v3454_v33 = vld [vmem:[#allocation9 + $0x4] ss:$24 sps:$4 sm:$0xff]  }
 0x1ef   : > { %1461 = vmatprep.subr.bf16.mxu1 %v3400_v37  ;;  %1965 = vmatprep.subr.bf16.mxu0 %v3454_v33  ;;  %v3464_v37 = vld [vmem:[#allocation9 + $0x60] ss:$24 sps:$4 sm:$0xff]   ;;  %v3500_v33 = vld [vmem:[#allocation9 + $0x10] ss:$24 sps:$4 sm:$0xff]  }
 0x1f1   : > { %2992 = vmatmul.mubr.msk.f32.gmra.mrb[14].mxu1 %vm1052_vm0, %v1051_v34  ;;  %v3460_v34 = vld [vmem:[#allocation9 + $0x34] ss:$24 sps:$4 sm:$0xff]  }
 0x1f2   : > { %1487 = vmatprep.mubr.bf16.mxu1 %v3835_v0  ;;  %1462 = vmatpush1.bf16.msra.mxu1 %v3398_v38  ;;  %v3472_v38 = vld [vmem:[#allocation9 + $0x94] ss:$24 sps:$4 sm:$0xff]  }
 0x1f3   : > { %1463 = vmatprep.subr.bf16.mxu1 %v3406_v41  ;;  %v3476_v41 = vld [vmem:[#allocation9 + $0xc0] ss:$24 sps:$4 sm:$0xff]  }
 0x1f6   : > { %1464 = vmatpush1.bf16.msra.mxu1 %v3404_v42 }
 0x1f7   : > { %1465 = vmatprep.subr.bf16.mxu1 %v3412_v45 }
 0x1fa   : > { %1466 = vmatpush1.bf16.msra.mxu1 %v3410_v46 }
 0x1fb   : > { %1467 = vmatprep.subr.bf16.mxu1 %v3418_v49 }
 0x1fe   : > { %1468 = vmatpush1.bf16.msra.mxu1 %v3416_v50 }
 0x1ff   : > { %1469 = vmatprep.subr.bf16.mxu1 %v3424_v54 }
 0x202   : > { %1470 = vmatpush1.bf16.msra.mxu1 %v3422_v55 }
 0x203   : > { %1541 = vmatprep.subr.bf16.mxu1 %v3430_v58 }
 0x2b8   : > { %v1131_v59 = vpop.f32.mrb[8].mxu1 }
 0x2b9   : > { %v1133_v60 = vpop.f32.mrb[9].mxu1 }
 0x2ba   : > { %v1154_v61 = vmax.f32 %v1131_v59, %v1133_v60 }
 0x2bc   : > { %v1137_v62 = vpop.f32.mrb[10].mxu1 }
 0x2bd   : > { %v1139_v63 = vpop.f32.mrb[11].mxu1 }
 0x2be   : > { %v1155_v1 = vmax.f32 %v1137_v62, %v1139_v63  ;;  %v1584_v62 = vld [vmem:[#allocation6] sm:$0xff] }
 0x2bf   : > { %v3455_v63 = vld [vmem:[#allocation9 + $0x8] ss:$24 sps:$4 sm:$0xff]  }
 0x2c0   : > { %v1143_v2 = vpop.f32.mrb[12].mxu1 }
 0x2c1   : > { %v1145_v3 = vpop.f32.mrb[13].mxu1 }
 0x2c2   : > { %v1156_v4 = vmax.f32 %v1143_v2, %v1145_v3  ;;  %v1585_v2 = vld [vmem:[#allocation6 + $0x8] sm:$0xff] }
 0x2c3   : > { %v3461_v3 = vld [vmem:[#allocation9 + $0x38] ss:$24 sps:$4 sm:$0xff]  }
 0x2c4   : > { %v1158_v5 = vmax.f32 %v1154_v61, %v1156_v4  ;;  %v1149_v6 = vpop.f32.mrb[14].mxu1  ;;  %v3457_v61 = vld [vmem:[#allocation9 + $0xc] ss:$24 sps:$4 sm:$0xff]  }
 0x2c5   : > { %v1151_v8 = vpop.f32.mrb[15].mxu1  ;;  %v3469_v4 = vld [vmem:[#allocation9 + $0x6c] ss:$24 sps:$4 sm:$0xff]  }
 0x2c6   : > { %v1157_v9 = vmax.f32 %v1149_v6, %v1151_v8  ;;  %v1162_v11 = vadd.f32 %v1160_v7, %v1158_v5  ;;  %v3467_v5 = vld [vmem:[#allocation9 + $0x68] ss:$24 sps:$4 sm:$0xff]   ;;  %v3475_v6 = vld [vmem:[#allocation9 + $0x9c] ss:$24 sps:$4 sm:$0xff]   ;;  %v3473_v7 = vld [vmem:[#allocation9 + $0x98] ss:$24 sps:$4 sm:$0xff]  }
 0x2c7   : > { %v3481_v8 = vld [vmem:[#allocation9 + $0xcc] ss:$24 sps:$4 sm:$0xff]  }
 0x2c8   : > { %v1159_v12 = vmax.f32 %v1155_v1, %v1157_v9  ;;  %v1164_v14 = vmax.f32 %v1162_v11, 0.0  ;;  %v3463_v1 = vld [vmem:[#allocation9 + $0x3c] ss:$24 sps:$4 sm:$0xff]   ;;  %v3479_v9 = vld [vmem:[#allocation9 + $0xc8] ss:$24 sps:$4 sm:$0xff]  }
 0x2c9   : > { %v3482_v11 = vld [vmem:[#allocation9 + $0xf0] ss:$24 sps:$4 sm:$0xff]  }
 0x2ca   : > { %v1163_v13 = vadd.f32 %v1161_v10, %v1159_v12  ;;  %v3484_v10 = vld [vmem:[#allocation9 + $0xf4] ss:$24 sps:$4 sm:$0xff]  }
 0x2cb   : > { %v3487_v12 = vld [vmem:[#allocation9 + $0xfc] ss:$24 sps:$4 sm:$0xff]  }
 0x2cc   : > { %v1165_v15 = vmax.f32 %v1163_v13, 0.0  ;;  %v3485_v13 = vld [vmem:[#allocation9 + $0xf8] ss:$24 sps:$4 sm:$0xff]  }
 0x2ce   : > { %v1166_v17 = vpack.c.bf16 %v1165_v15, %v1164_v14  ;;  %v3490_v14 = vld [vmem:[#allocation9 + $0x124] ss:$24 sps:$4 sm:$0xff]   ;;  %v3488_v15 = vld [vmem:[#allocation9 + $0x120] ss:$24 sps:$4 sm:$0xff]  }
 0x2d0   : > { %1488 = vmatmul.mubr.bf16.vlgmr.msra.gmra.mrb[16].mxu1 %v1166_v17  ;;  %1531 = vmatmul.mubr.bf16.vlgmr.msra.gmra.mrb[16].mxu0 %v1166_v17 }
 0x2d1   : > { %1542 = vmatpush1.bf16.msra.mxu1 %v3428_v16  ;;  %1573 = vmatprep.mubr.bf16.mxu1 %v3835_v0  ;;  %v3493_v16 = vld [vmem:[#allocation9 + $0x12c] ss:$24 sps:$4 sm:$0xff]  }
 0x2d2   : > { %1543 = vmatprep.subr.bf16.mxu1 %v3433_v18  ;;  %1997 = vmatprep.mubr.bf16.mxu0 %v3835_v0  ;;  %v3496_v18 = vld [vmem:[#allocation9 + $0x154] ss:$24 sps:$4 sm:$0xff]  }
 0x2d3   : > { %1966 = vmatpush1.bf16.msra.mxu0 %v3452_v32 }
 0x2d4   : > { %1967 = vmatprep.subr.bf16.mxu0 %v3460_v34 }
 0x2d5   : > { %1544 = vmatpush1.bf16.msra.mxu1 %v3431_v19  ;;  %v3494_v19 = vld [vmem:[#allocation9 + $0x150] ss:$24 sps:$4 sm:$0xff]  }
 0x2d6   : > { %1545 = vmatprep.subr.bf16.mxu1 %v3436_v20  ;;  %v3499_v20 = vld [vmem:[#allocation9 + $0x15c] ss:$24 sps:$4 sm:$0xff]  }
 0x2d7   : > { %1968 = vmatpush1.bf16.msra.mxu0 %v3458_v35  ;;  %v3505_v35 = vld [vmem:[#allocation9 + $0x44] ss:$24 sps:$4 sm:$0xff]  }
 0x2d8   : > { %1969 = vmatprep.subr.bf16.mxu0 %v3466_v36  ;;  %v3503_v36 = vld [vmem:[#allocation9 + $0x40] ss:$24 sps:$4 sm:$0xff]  }
 0x2d9   : > { %1546 = vmatpush1.bf16.msra.mxu1 %v3434_v21  ;;  %v3497_v21 = vld [vmem:[#allocation9 + $0x158] ss:$24 sps:$4 sm:$0xff]  }
 0x2da   : > { %1547 = vmatprep.subr.bf16.mxu1 %v3439_v22  ;;  %v3502_v22 = vld [vmem:[#allocation9 + $0x14] ss:$24 sps:$4 sm:$0xff]  }
 0x2db   : > { %1970 = vmatpush1.bf16.msra.mxu0 %v3464_v37  ;;  %v3508_v37 = vld [vmem:[#allocation9 + $0x74] ss:$24 sps:$4 sm:$0xff]  }
 0x2dc   : > { %1971 = vmatprep.subr.bf16.mxu0 %v3472_v38  ;;  %v3506_v38 = vld [vmem:[#allocation9 + $0x70] ss:$24 sps:$4 sm:$0xff]  }
 0x2dd   : > { %1548 = vmatpush1.bf16.msra.mxu1 %v3437_v23 }
 0x2de   : > { %1549 = vmatprep.subr.bf16.mxu1 %v3442_v24 }
 0x2df   : > { %1972 = vmatpush1.bf16.msra.mxu0 %v3470_v39  ;;  %v3511_v39 = vld [vmem:[#allocation9 + $0xa4] ss:$24 sps:$4 sm:$0xff]  }
 0x2e0   : > { %1973 = vmatprep.subr.bf16.mxu0 %v3478_v40  ;;  %v3509_v40 = vld [vmem:[#allocation9 + $0xa0] ss:$24 sps:$4 sm:$0xff]  }
 0x2e1   : > { %1550 = vmatpush1.bf16.msra.mxu1 %v3440_v25 }
 0x2e2   : > { %1551 = vmatprep.subr.bf16.mxu1 %v3445_v26 }
 0x2e3   : > { %1974 = vmatpush1.bf16.msra.mxu0 %v3476_v41  ;;  %v3514_v41 = vld [vmem:[#allocation9 + $0xd4] ss:$24 sps:$4 sm:$0xff]  }
 0x2e4   : > { %1975 = vmatprep.subr.bf16.mxu0 %v3484_v10 }
 0x2e5   : > { %1552 = vmatpush1.bf16.msra.mxu1 %v3443_v27 }
 0x2e6   : > { %1553 = vmatprep.subr.bf16.mxu1 %v3448_v28 }
 0x2e7   : > { %1976 = vmatpush1.bf16.msra.mxu0 %v3482_v11  ;;  %v3532_v11 = vld [vmem:[#allocation10 + $0x34] ss:$24 sps:$4 sm:$0xff]  }
 0x2e8   : > { %1977 = vmatprep.subr.bf16.mxu0 %v3490_v14  ;;  %v3530_v14 = vld [vmem:[#allocation10 + $0x30] ss:$24 sps:$4 sm:$0xff]  }
 0x2e9   : > { %1554 = vmatpush1.bf16.msra.mxu1 %v3446_v29  ;;  %v1673_v29 = vld [vmem:[#allocation7] sm:$0xff] }
 0x2ea   : > { %1555 = vmatprep.subr.bf16.mxu1 %v3451_v30 }
 0x2eb   : > { %1978 = vmatpush1.bf16.msra.mxu0 %v3488_v15  ;;  %v3538_v15 = vld [vmem:[#allocation10 + $0x64] ss:$24 sps:$4 sm:$0xff]  }
 0x2ec   : > { %1979 = vmatprep.subr.bf16.mxu0 %v3496_v18  ;;  %v3542_v18 = vld [vmem:[#allocation10 + $0x90] ss:$24 sps:$4 sm:$0xff]  }
 0x2ed   : > { %1556 = vmatpush1.bf16.msra.mxu1 %v3449_v31 }
 0x2ef   : > { %1980 = vmatpush1.bf16.msra.mxu0 %v3494_v19  ;;  %v3550_v19 = vld [vmem:[#allocation10 + $0xc4] ss:$24 sps:$4 sm:$0xff]  }
 0x2f0   : > { %1574 = vmatmul.mubr.bf16.vlgmr.msra.gmra.mrb[20].mxu1 %v1166_v17  ;;  %v3491_v17 = vld [vmem:[#allocation9 + $0x128] ss:$24 sps:$4 sm:$0xff]   ;;  %2047 = vmatprep.subr.bf16.mxu0 %v3502_v22 }
 0x2f1   : > { %1657 = vmatprep.mubr.f32.mxu1 %v3836_v51  ;;  %v3551_v22 = vld [vmem:[#allocation10 + $0xc8] ss:$24 sps:$4 sm:$0xff]  }
 0x3a3   : > { %v1489_v42 = vpop.f32.mrb[16].mxu1  ;;  %v1532_v43 = vpop.f32.mrb[16].mxu0 }
 0x3a4   : > { %v1491_v44 = vpop.f32.mrb[17].mxu1  ;;  %v1534_v45 = vpop.f32.mrb[17].mxu0 }
 0x3a5   : > { %v1493_v46 = vpop.f32.mrb[18].mxu1  ;;  %v1536_v47 = vpop.f32.mrb[18].mxu0 }
 0x3a6   : > { %v3201_v48 = vpack.c.bf16 %v1493_v46, %v1489_v42  ;;  %v3205_v49 = vpack.c.bf16 %v1536_v47, %v1532_v43  ;;  %v1495_v50 = vpop.f32.mrb[19].mxu1  ;;  %v1538_v52 = vpop.f32.mrb[19].mxu0  ;;  %v3512_v42 = vld [vmem:[#allocation9 + $0xd0] ss:$24 sps:$4 sm:$0xff]   ;;  %v3517_v43 = vld [vmem:[#allocation9 + $0x104] ss:$24 sps:$4 sm:$0xff]  }
 0x3a7   : > { %v3199_v53 = vpack.c.bf16 %v1495_v50, %v1491_v44  ;;  %v3203_v54 = vpack.c.bf16 %v1538_v52, %v1534_v45  ;;  %v3515_v44 = vld [vmem:[#allocation9 + $0x100] ss:$24 sps:$4 sm:$0xff]   ;;  %v3520_v45 = vld [vmem:[#allocation9 + $0x134] ss:$24 sps:$4 sm:$0xff]   ;;  %v3518_v46 = vld [vmem:[#allocation9 + $0x130] ss:$24 sps:$4 sm:$0xff]  }
 0x3a8   : > { %v3523_v47 = vld [vmem:[#allocation9 + $0x164] ss:$24 sps:$4 sm:$0xff]  }
 0x3a9   : > { %3200 = vmatprep.subr.bf16.mxu1 %v3199_v53  ;;  %v3529_v50 = vld [vmem:[#allocation10 + $0xc] ss:$24 sps:$4 sm:$0xff]   ;;  %v3535_v52 = vld [vmem:[#allocation10 + $0x3c] ss:$24 sps:$4 sm:$0xff]   ;;  %v3533_v53 = vld [vmem:[#allocation10 + $0x38] ss:$24 sps:$4 sm:$0xff]  }
 0x3aa   : > { %3202 = vmatpush1.bf16.msra.mxu1 %v3201_v48  ;;  %v3521_v48 = vld [vmem:[#allocation9 + $0x160] ss:$24 sps:$4 sm:$0xff]  }
 0x3ab   : > { %3204 = vmatprep.subr.bf16.mxu1 %v3203_v54  ;;  %v3541_v54 = vld [vmem:[#allocation10 + $0x6c] ss:$24 sps:$4 sm:$0xff]  }
 0x3ae   : > { %3206 = vmatpush1.bf16.msra.mxu1 %v3205_v49  ;;  %v3527_v49 = vld [vmem:[#allocation10 + $0x8] ss:$24 sps:$4 sm:$0xff]  }
 0x3c3   : > { %v1575_v55 = vpop.f32.mrb[20].mxu1 }
 0x3c4   : > { %v1577_v56 = vpop.f32.mrb[21].mxu1 }
 0x3c5   : > { %v1579_v57 = vpop.f32.mrb[22].mxu1 }
 0x3c6   : > { %v3209_v58 = vpack.c.bf16 %v1579_v57, %v1575_v55  ;;  %v1581_v59 = vpop.f32.mrb[23].mxu1  ;;  %v3539_v55 = vld [vmem:[#allocation10 + $0x68] ss:$24 sps:$4 sm:$0xff]   ;;  %v3545_v57 = vld [vmem:[#allocation10 + $0x98] ss:$24 sps:$4 sm:$0xff]  }
 0x3c7   : > { %v3207_v60 = vpack.c.bf16 %v1581_v59, %v1577_v56  ;;  %v3547_v56 = vld [vmem:[#allocation10 + $0x9c] ss:$24 sps:$4 sm:$0xff]  }
 0x3c9   : > { %3208 = vmatprep.subr.bf16.mxu1 %v3207_v60 }
 0x3ca   : > { %3210 = vmatpush1.bf16.msra.mxu1 %v3209_v58 }
 0x3cb   : > { %2006 = vmatprep.subr.bf16.mxu1 %v3457_v61 }
 0x3cd   : > { %3041 = vmatmul.mubr.msk.f32.vlgmr.msra.gmra.mrb[24].mxu1 %vm1586_vm1, %v1584_v62 }
 0x3ce   : > { %1663 = vmatprep.mubr.f32.mxu1 %v3836_v51  ;;  %2007 = vmatpush1.bf16.msra.mxu1 %v3455_v63 }
 0x3cf   : > { %2008 = vmatprep.subr.bf16.mxu1 %v3463_v1 }
 0x3d1   : > { %3042 = vmatmul.mubr.msk.f32.gmra.mrb[26].mxu1 %vm1586_vm1, %v1585_v2 }
 0x3d2   : > { %2009 = vmatpush1.bf16.msra.mxu1 %v3461_v3  ;;  %2038 = vmatprep.mubr.bf16.mxu1 %v3835_v0 }
 0x3d3   : > { %2010 = vmatprep.subr.bf16.mxu1 %v3469_v4 }
 0x3d6   : > { %2011 = vmatpush1.bf16.msra.mxu1 %v3467_v5 }
 0x3d7   : > { %2012 = vmatprep.subr.bf16.mxu1 %v3475_v6  ;;  %v3526_v6 = vld [vmem:[#allocation10 + $0x4] ss:$24 sps:$4 sm:$0xff]  }
 0x3da   : > { %2013 = vmatpush1.bf16.msra.mxu1 %v3473_v7 }
 0x3db   : > { %2014 = vmatprep.subr.bf16.mxu1 %v3481_v8  ;;  %v2088_v8 = vld [vmem:[%s4397_s8] sm:$0xff] }
 0x3de   : > { %2015 = vmatpush1.bf16.msra.mxu1 %v3479_v9  ;;  %v3524_v9 = vld [vmem:[#allocation10] ss:$24 sps:$4 sm:$0xff]  }
 0x3df   : > { %2016 = vmatprep.subr.bf16.mxu1 %v3487_v12 }
 0x3e2   : > { %2017 = vmatpush1.bf16.msra.mxu1 %v3485_v13  ;;  %v2089_v13 = vld [vmem:[%s4397_s8 + $0x8] sm:$0xff] }
 0x3e3   : > { %2018 = vmatprep.subr.bf16.mxu1 %v3493_v16  ;;  %v3536_v16 = vld [vmem:[#allocation10 + $0x60] ss:$24 sps:$4 sm:$0xff]  }
 0x3e6   : > { %2019 = vmatpush1.bf16.msra.mxu1 %v3491_v17  ;;  %v3544_v17 = vld [vmem:[#allocation10 + $0x94] ss:$24 sps:$4 sm:$0xff]  }
 0x3e7   : > { %2020 = vmatprep.subr.bf16.mxu1 %v3499_v20  ;;  %v3548_v20 = vld [vmem:[#allocation10 + $0xc0] ss:$24 sps:$4 sm:$0xff]  }
 0x3ea   : > { %2021 = vmatpush1.bf16.msra.mxu1 %v3497_v21  ;;  %v3553_v21 = vld [vmem:[#allocation10 + $0xcc] ss:$24 sps:$4 sm:$0xff]  }
 0x4a0   : > { %v1659_v23 = vpop.f32.mrb[24].mxu1 }
 0x4a1   : > { %v1661_v24 = vpop.f32.mrb[25].mxu1 }
 0x4a2   : > { %v1670_v25 = vmax.f32 %v1659_v23, %v1661_v24  ;;  %v3556_v23 = vld [vmem:[#allocation10 + $0xf4] ss:$24 sps:$4 sm:$0xff]   ;;  %v3554_v24 = vld [vmem:[#allocation10 + $0xf0] ss:$24 sps:$4 sm:$0xff]  }
 0x4a4   : > { %v1665_v26 = vpop.f32.mrb[26].mxu1 }
 0x4a5   : > { %v1667_v27 = vpop.f32.mrb[27].mxu1 }
 0x4a6   : > { %v1671_v28 = vmax.f32 %v1665_v26, %v1667_v27  ;;  %v3557_v26 = vld [vmem:[#allocation10 + $0xf8] ss:$24 sps:$4 sm:$0xff]   ;;  %v3562_v27 = vld [vmem:[#allocation10 + $0x124] ss:$24 sps:$4 sm:$0xff]  }
 0x4a8   : > { %v1672_v30 = vmax.f32 %v1670_v25, %v1671_v28  ;;  %v3559_v25 = vld [vmem:[#allocation10 + $0xfc] ss:$24 sps:$4 sm:$0xff]   ;;  %v3560_v28 = vld [vmem:[#allocation10 + $0x120] ss:$24 sps:$4 sm:$0xff]  }
 0x4aa   : > { %v1674_v31 = vadd.f32 %v1673_v29, %v1672_v30  ;;  %v3565_v29 = vld [vmem:[#allocation10 + $0x12c] ss:$24 sps:$4 sm:$0xff]   ;;  %v3563_v30 = vld [vmem:[#allocation10 + $0x128] ss:$24 sps:$4 sm:$0xff]  }
 0x4ac   : > { %v1675_v32 = vmax.f32 %v1674_v31, 0.0  ;;  %v3568_v31 = vld [vmem:[#allocation10 + $0x154] ss:$24 sps:$4 sm:$0xff]  }
 0x4ae   : > { %v1676_v34 = vpack.c.bf16 %v1675_v32, %v1675_v32  ;;  %v3566_v32 = vld [vmem:[#allocation10 + $0x150] ss:$24 sps:$4 sm:$0xff]  }
 0x4b0   : > { %1998 = vmatmul.mubr.bf16.vlgmr.msra.gmra.mrb[20].mxu0 %v1676_v34  ;;  %2039 = vmatmul.mubr.bf16.vlgmr.msra.gmra.mrb[28].mxu1 %v1676_v34 }
 0x4b1   : > { %2048 = vmatpush1.bf16.msra.mxu0 %v3500_v33  ;;  %2079 = vmatprep.mubr.bf16.mxu0 %v3835_v0  ;;  %v3571_v33 = vld [vmem:[#allocation10 + $0x15c] ss:$24 sps:$4 sm:$0xff]  }
 0x4b2   : > { %2049 = vmatprep.subr.bf16.mxu0 %v3505_v35  ;;  %2161 = vmatprep.mubr.f32.mxu1 %v3836_v51  ;;  %v3574_v35 = vld [vmem:[#allocation10 + $0x14] ss:$24 sps:$4 sm:$0xff]  }
 0x4b5   : > { %2050 = vmatpush1.bf16.msra.mxu0 %v3503_v36 }
 0x4b6   : > { %2051 = vmatprep.subr.bf16.mxu0 %v3508_v37 }
 0x4b9   : > { %2052 = vmatpush1.bf16.msra.mxu0 %v3506_v38 }
 0x4ba   : > { %2053 = vmatprep.subr.bf16.mxu0 %v3511_v39 }
 0x4bd   : > { %2054 = vmatpush1.bf16.msra.mxu0 %v3509_v40 }
 0x4be   : > { %2055 = vmatprep.subr.bf16.mxu0 %v3514_v41 }
 0x4c1   : > { %2056 = vmatpush1.bf16.msra.mxu0 %v3512_v42  ;;  %v2177_v42 = vld [vmem:[%s4398_s9] sm:$0xff] }
 0x4c2   : > { %2057 = vmatprep.subr.bf16.mxu0 %v3517_v43 }
 0x4c5   : > { %2058 = vmatpush1.bf16.msra.mxu0 %v3515_v44 }
 0x4c6   : > { %2059 = vmatprep.subr.bf16.mxu0 %v3520_v45 }
 0x4c9   : > { %2060 = vmatpush1.bf16.msra.mxu0 %v3518_v46  ;;  %v3572_v46 = vld [vmem:[#allocation10 + $0x10] ss:$24 sps:$4 sm:$0xff]  }
 0x4ca   : > { %2061 = vmatprep.subr.bf16.mxu0 %v3523_v47 }
 0x4cd   : > { %2062 = vmatpush1.bf16.msra.mxu0 %v3521_v48  ;;  %v3577_v48 = vld [vmem:[#allocation10 + $0x44] ss:$24 sps:$4 sm:$0xff]  }
 0x4ce   : > { %2510 = vmatprep.subr.bf16.mxu0 %v3529_v50  ;;  %v3580_v50 = vld [vmem:[#allocation10 + $0x74] ss:$24 sps:$4 sm:$0xff]  }
 0x4d0   : > { %2080 = vmatmul.mubr.bf16.vlgmr.msra.gmra.mrb[24].mxu0 %v1676_v34  ;;  %v3569_v34 = vld [vmem:[#allocation10 + $0x158] ss:$24 sps:$4 sm:$0xff]  }
 0x4d1   : > { %2542 = vmatprep.mubr.bf16.mxu0 %v3835_v0  ;;  %2511 = vmatpush1.bf16.msra.mxu0 %v3527_v49  ;;  %v3575_v49 = vld [vmem:[#allocation10 + $0x40] ss:$24 sps:$4 sm:$0xff]  }
 0x4d2   : > { %2512 = vmatprep.subr.bf16.mxu0 %v3535_v52  ;;  %v3578_v52 = vld [vmem:[#allocation10 + $0x70] ss:$24 sps:$4 sm:$0xff]  }
 0x4d5   : > { %2513 = vmatpush1.bf16.msra.mxu0 %v3533_v53  ;;  %v3583_v53 = vld [vmem:[#allocation10 + $0xa4] ss:$24 sps:$4 sm:$0xff]  }
 0x4d6   : > { %2514 = vmatprep.subr.bf16.mxu0 %v3541_v54  ;;  %v3581_v54 = vld [vmem:[#allocation10 + $0xa0] ss:$24 sps:$4 sm:$0xff]  }
 0x4d9   : > { %2515 = vmatpush1.bf16.msra.mxu0 %v3539_v55  ;;  %v3586_v55 = vld [vmem:[#allocation10 + $0xd4] ss:$24 sps:$4 sm:$0xff]  }
 0x4da   : > { %2516 = vmatprep.subr.bf16.mxu0 %v3547_v56  ;;  %v3584_v56 = vld [vmem:[#allocation10 + $0xd0] ss:$24 sps:$4 sm:$0xff]  }
 0x4dd   : > { %2517 = vmatpush1.bf16.msra.mxu0 %v3545_v57  ;;  %v3589_v57 = vld [vmem:[#allocation10 + $0x104] ss:$24 sps:$4 sm:$0xff]  }
 0x4de   : > { %2518 = vmatprep.subr.bf16.mxu0 %v3553_v21  ;;  %v3602_v21 = vld [vmem:[%s4432_s24 + $0x30] sm:$0xff]  }
 0x4e1   : > { %2519 = vmatpush1.bf16.msra.mxu0 %v3551_v22  ;;  %v3603_v22 = vld [vmem:[%s4432_s24 + $0x38] sm:$0xff]  }
 0x4e2   : > { %2520 = vmatprep.subr.bf16.mxu0 %v3559_v25 }
 0x4e5   : > { %2521 = vmatpush1.bf16.msra.mxu0 %v3557_v26 }
 0x4e6   : > { %2522 = vmatprep.subr.bf16.mxu0 %v3565_v29  ;;  %v2680_v29 = vld [vmem:[%s4433_s22] sm:$0xff] }
 0x4e9   : > { %2523 = vmatpush1.bf16.msra.mxu0 %v3563_v30 }
 0x4ea   : > { %2524 = vmatprep.subr.bf16.mxu0 %v3571_v33 }
 0x4ed   : > { %2525 = vmatpush1.bf16.msra.mxu0 %v3569_v34 }
 0x583   : > { %v1999_v58 = vpop.f32.mrb[20].mxu0  ;;  %v2040_v59 = vpop.f32.mrb[28].mxu1 }
 0x584   : > { %v3213_v60 = vpack.c.bf16 %v2040_v59, %v1999_v58  ;;  %v2001_v61 = vpop.f32.mrb[21].mxu0  ;;  %v2042_v62 = vpop.f32.mrb[29].mxu1  ;;  %v3587_v58 = vld [vmem:[#allocation10 + $0x100] ss:$24 sps:$4 sm:$0xff]   ;;  %v3590_v59 = vld [vmem:[#allocation10 + $0x130] ss:$24 sps:$4 sm:$0xff]  }
 0x585   : > { %v3211_v63 = vpack.c.bf16 %v2042_v62, %v2001_v61  ;;  %v2003_v1 = vpop.f32.mrb[22].mxu0  ;;  %v2044_v2 = vpop.f32.mrb[30].mxu1  ;;  %v3593_v61 = vld [vmem:[#allocation10 + $0x160] ss:$24 sps:$4 sm:$0xff]  }
 0x586   : > { %v2004_v3 = vpop.f32.mrb[23].mxu0  ;;  %v2045_v4 = vpop.f32.mrb[31].mxu1 }
 0x587   : > { %3212 = vmatprep.subr.bf16.mxu1 %v3211_v63 }
 0x588   : > { %3214 = vmatpush1.bf16.msra.mxu1 %v3213_v60  ;;  %v3595_v60 = vld [vmem:[#allocation10 + $0x164] ss:$24 sps:$4 sm:$0xff]  }
 0x5a3   : > { %v2081_v5 = vpop.f32.mrb[24].mxu0 }
 0x5a4   : > { %v2083_v7 = vpop.f32.mrb[25].mxu0 }
 0x5a5   : > { %v2085_v10 = vpop.f32.mrb[26].mxu0  ;;  %2101 = vmatprep.subr.mxu1 %v2083_v7 }
 0x5a6   : > { %v2086_v12 = vpop.f32.mrb[27].mxu0  ;;  %2102 = vmatpush1.msra.mxu1 %v2081_v5 }
 0x5a7   : > { %3091 = vmatmul.mubr.msk.f32.vlgmr.msra.gmra.mrb[32].mxu1 %vm2090_vm2, %v2088_v8  ;;  %2469 = vmatprep.subr.bf16.mxu1 %v3526_v6  ;;  %v3596_v12 = vld [vmem:[%s4432_s24] sm:$0xff]  }
 0x5a8   : > { %2167 = vmatprep.mubr.f32.mxu1 %v3836_v51  ;;  %2470 = vmatpush1.bf16.msra.mxu1 %v3524_v9 }
 0x5a9   : > { %2471 = vmatprep.subr.bf16.mxu1 %v3532_v11  ;;  %v2592_v11 = vld [vmem:[#allocation12] sm:$0xff] }
 0x5ab   : > { %3092 = vmatmul.mubr.msk.f32.gmra.mrb[34].mxu1 %vm2090_vm2, %v2089_v13 }
 0x5ac   : > { %2472 = vmatpush1.bf16.msra.mxu1 %v3530_v14  ;;  %2501 = vmatprep.mubr.bf16.mxu1 %v3835_v0 }
 0x5ad   : > { %2473 = vmatprep.subr.bf16.mxu1 %v3538_v15  ;;  %v2593_v15 = vld [vmem:[#allocation12 + $0x8] sm:$0xff] }
 0x5b0   : > { %2474 = vmatpush1.bf16.msra.mxu1 %v3536_v16  ;;  %v3597_v16 = vld [vmem:[%s4432_s24 + $0x8] sm:$0xff]  }
 0x5b1   : > { %2475 = vmatprep.subr.bf16.mxu1 %v3544_v17  ;;  %v3598_v17 = vld [vmem:[%s4432_s24 + $0x10] sm:$0xff]  }
 0x5b4   : > { %2476 = vmatpush1.bf16.msra.mxu1 %v3542_v18  ;;  %v3599_v18 = vld [vmem:[%s4432_s24 + $0x18] sm:$0xff]  }
 0x5b5   : > { %2477 = vmatprep.subr.bf16.mxu1 %v3550_v19  ;;  %v3600_v19 = vld [vmem:[%s4432_s24 + $0x20] sm:$0xff]  }
 0x5b8   : > { %2478 = vmatpush1.bf16.msra.mxu1 %v3548_v20  ;;  %v3601_v20 = vld [vmem:[%s4432_s24 + $0x28] sm:$0xff]  }
 0x5b9   : > { %2479 = vmatprep.subr.bf16.mxu1 %v3556_v23 }
 0x5bc   : > { %2480 = vmatpush1.bf16.msra.mxu1 %v3554_v24 }
 0x5bd   : > { %2481 = vmatprep.subr.bf16.mxu1 %v3562_v27 }
 0x5c0   : > { %2482 = vmatpush1.bf16.msra.mxu1 %v3560_v28 }
 0x5c1   : > { %2483 = vmatprep.subr.bf16.mxu1 %v3568_v31 }
 0x5c4   : > { %2484 = vmatpush1.bf16.msra.mxu1 %v3566_v32 }
 0x5c5   : > { %2551 = vmatprep.subr.bf16.mxu1 %v3574_v35 }
 0x67a   : > { %v2163_v36 = vpop.f32.mrb[32].mxu1 }
 0x67b   : > { %v2165_v37 = vpop.f32.mrb[33].mxu1 }
 0x67c   : > { %v2174_v38 = vmax.f32 %v2163_v36, %v2165_v37 }
 0x67e   : > { %v2169_v39 = vpop.f32.mrb[34].mxu1 }
 0x67f   : > { %v2171_v40 = vpop.f32.mrb[35].mxu1 }
 0x680   : > { %v2175_v41 = vmax.f32 %v2169_v39, %v2171_v40 }
 0x682   : > { %v2176_v43 = vmax.f32 %v2174_v38, %v2175_v41 }
 0x684   : > { %v2178_v44 = vadd.f32 %v2177_v42, %v2176_v43 }
 0x686   : > { %v2179_v45 = vmax.f32 %v2178_v44, 0.0 }
 0x688   : > { %v2180_v47 = vpack.c.bf16 %v2179_v45, %v2179_v45 }
 0x68a   : > { %2502 = vmatmul.mubr.bf16.vlgmr.msra.gmra.mrb[36].mxu1 %v2180_v47  ;;  %2543 = vmatmul.mubr.bf16.vlgmr.msra.gmra.mrb[28].mxu0 %v2180_v47 }
 0x68b   : > { %2552 = vmatpush1.bf16.msra.mxu1 %v3572_v46  ;;  %2583 = vmatprep.mubr.bf16.mxu1 %v3835_v0  ;;  %v3592_v0 = vld [vmem:[#allocation10 + $0x134] ss:$24 sps:$4 sm:$0xff]  }
 0x68c   : > { %2553 = vmatprep.subr.bf16.mxu1 %v3577_v48  ;;  %2664 = vmatprep.mubr.f32.mxu0 %v3836_v51 }
 0x68f   : > { %2554 = vmatpush1.bf16.msra.mxu1 %v3575_v49 }
 0x690   : > { %2555 = vmatprep.subr.bf16.mxu1 %v3580_v50 }
 0x693   : > { %2556 = vmatpush1.bf16.msra.mxu1 %v3578_v52 }
 0x694   : > { %2557 = vmatprep.subr.bf16.mxu1 %v3583_v53 }
 0x697   : > { %2558 = vmatpush1.bf16.msra.mxu1 %v3581_v54 }
 0x698   : > { %2559 = vmatprep.subr.bf16.mxu1 %v3586_v55 }
 0x69b   : > { %2560 = vmatpush1.bf16.msra.mxu1 %v3584_v56 }
 0x69c   : > { %2561 = vmatprep.subr.bf16.mxu1 %v3589_v57 }
 0x69f   : > { %2562 = vmatpush1.bf16.msra.mxu1 %v3587_v58 }
 0x6a0   : > { %2563 = vmatprep.subr.bf16.mxu1 %v3592_v0 }
 0x6a3   : > { %2564 = vmatpush1.bf16.msra.mxu1 %v3590_v59 }
 0x6a4   : > { %2565 = vmatprep.subr.bf16.mxu1 %v3595_v60 }
 0x6a7   : > { %2566 = vmatpush1.bf16.msra.mxu1 %v3593_v61 }
 0x6aa   : > { %2584 = vmatmul.mubr.bf16.vlgmr.msra.gmra.mrb[40].mxu1 %v2180_v47 }
 0x75d   : > { %v2503_v62 = vpop.f32.mrb[36].mxu1  ;;  %v2544_v63 = vpop.f32.mrb[28].mxu0 }
 0x75e   : > { %v3217_v1 = vpack.c.bf16 %v2544_v63, %v2503_v62  ;;  %v2505_v2 = vpop.f32.mrb[37].mxu1  ;;  %v2546_v3 = vpop.f32.mrb[29].mxu0 }
 0x75f   : > { %v3215_v4 = vpack.c.bf16 %v2546_v3, %v2505_v2  ;;  %v2507_v5 = vpop.f32.mrb[38].mxu1  ;;  %v2548_v6 = vpop.f32.mrb[30].mxu0 }
 0x760   : > { %v2508_v7 = vpop.f32.mrb[39].mxu1  ;;  %v2549_v8 = vpop.f32.mrb[31].mxu0 }
 0x761   : > { %3216 = vmatprep.subr.bf16.mxu0 %v3215_v4 }
 0x762   : > { %3218 = vmatpush1.bf16.msra.mxu0 %v3217_v1 }
 0x77d   : > { %v2585_v9 = vpop.f32.mrb[40].mxu1 }
 0x77e   : > { %v2587_v10 = vpop.f32.mrb[41].mxu1 }
 0x77f   : > { %v2589_v13 = vpop.f32.mrb[42].mxu1  ;;  %2604 = vmatprep.subr.mxu0 %v2587_v10 }
 0x780   : > { %v2590_v14 = vpop.f32.mrb[43].mxu1  ;;  %2605 = vmatpush1.msra.mxu0 %v2585_v9 }
 0x781   : > { %3141 = vmatmul.mubr.msk.f32.vlgmr.msra.gmra.mrb[32].mxu0 %vm2090_vm2, %v2592_v11  ;;  %3163 = vmatprep.subr.bf16.mxu0 %v3836_v51 }
 0x782   : > { %2670 = vmatprep.mubr.f32.mxu0 %v3836_v51  ;;  %3164 = vmatpush3.bf16.msra.mxu0 %v3596_v12 }
 0x783   : > { %3165 = vmatprep.subr.bf16.mxu0 %v3836_v51 }
 0x785   : > { %3142 = vmatmul.mubr.msk.f32.gmra.mrb[34].mxu0 %vm2090_vm2, %v2593_v15 }
 0x786   : > { %3166 = vmatpush3.bf16.msra.mxu0 %v3597_v16  ;;  %3179 = vmatprep.mubr.msk.bf16.mxu0 %vm3837_vm3, %v3836_v51 }
 0x787   : > { %3167 = vmatprep.subr.bf16.mxu0 %v3836_v51 }
 0x78a   : > { %3168 = vmatpush3.bf16.msra.mxu0 %v3598_v17 }
 0x78b   : > { %3169 = vmatprep.subr.bf16.mxu0 %v3836_v51 }
 0x78e   : > { %3170 = vmatpush3.bf16.msra.mxu0 %v3599_v18 }
 0x78f   : > { %3171 = vmatprep.subr.bf16.mxu0 %v3836_v51 }
 0x792   : > { %3172 = vmatpush3.bf16.msra.mxu0 %v3600_v19 }
 0x793   : > { %3173 = vmatprep.subr.bf16.mxu0 %v3836_v51 }
 0x796   : > { %3174 = vmatpush3.bf16.msra.mxu0 %v3601_v20 }
 0x797   : > { %3175 = vmatprep.subr.bf16.mxu0 %v3836_v51 }
 0x79a   : > { %3176 = vmatpush3.bf16.msra.mxu0 %v3602_v21 }
 0x79b   : > { %3177 = vmatprep.subr.bf16.mxu0 %v3836_v51  ;;  %v3143_v51 = vld [vmem:[%s4434_s16] ss:$0 sm:$0xff] }
 0x79e   : > { %3178 = vmatpush3.bf16.msra.mxu0 %v3603_v22 }
 0x854   : > { %v2666_v23 = vpop.f32.mrb[32].mxu0 }
 0x855   : > { %v2668_v24 = vpop.f32.mrb[33].mxu0 }
 0x856   : > { %v2677_v25 = vmax.f32 %v2666_v23, %v2668_v24 }
 0x858   : > { %v2672_v26 = vpop.f32.mrb[34].mxu0 }
 0x859   : > { %v2674_v27 = vpop.f32.mrb[35].mxu0 }
 0x85a   : > { %v2678_v28 = vmax.f32 %v2672_v26, %v2674_v27 }
 0x85c   : > { %v2679_v30 = vmax.f32 %v2677_v25, %v2678_v28 }
 0x85e   : > { %v2681_v31 = vadd.f32 %v2680_v29, %v2679_v30 }
 0x860   : > { %v2682_v32 = vmax.f32 %v2681_v31, 0.0 }
 0x862   : > { %v2683_v33 = vpack.c.bf16 %v2682_v32, %v2682_v32 }
 0x864   : > { %3180 = vmatmul.mubr.bf16.vlgmr.msra.gmra.mrb[36].mxu0 %v2683_v33 }
 0x937   : > { %v2789_v34 = vpop.f32.mrb[36].mxu0 }
 0x938   : > { %v2790_v35 = vadd.f32 %v3143_v51, %v2789_v34  ;;  %v3181_v36 = vpop.f32.mrb[37].mxu0 }
 0x939   : > { %v2792_v37 = vpop.f32.mrb[38].mxu0 }
 0x93a   : > { %2795 = vst [vmem:[%s592_s27] sm:$0xff] %v2790_v35  ;;  %v3182_v38 = vpop.f32.mrb[39].mxu0 }
 0x93b PF: > { %s4436_s15 = sld [smem:[#allocation17_spill]] }
 0x941   : > { %s29_s18 = sadd.s32 1, %s4436_s15  }
 0x942   : > { %p26_p9 = scmp.ge.s32.totalorder %s29_s18, 4  }
 0x944   :  { %28 = sbr.rel (!%p26_p9) target bundleno = 10 (0xa), region = 139 }
 0x94b   :  { %2815 = vsyncpa [#allocation3], 1 }
 0x94c   :  { %2817 = vsyncpa [#allocation3 + $0x1], 1 }
 0x94d   :  { %2818 = vsyncpa [#allocation5], 1 }
 0x94e   :  { %2819 = vsyncpa [#allocation8], 1 }
 0x94f   :  { %2820 = vsyncpa [#allocation11], 1 }

</bundles_post_ra>
